<compile_context>
chip_gen: v5e
topology: v5e:2x2
jax: 0.10.0
libtpu: 0.0.40
codegen_flags: <defaults>
</compile_context>

<pallas_src>
import functools
import math

import jax
import jax.numpy as jnp
from jax.experimental import pallas as pl
from jax.experimental.pallas import tpu as pltpu


_LANE = 128


def _round_up(x, m):
    return ((x + m - 1) // m) * m


# ----------------------------------------------------------------------------
# Pallas kernels
# ----------------------------------------------------------------------------

def _linear_kernel(x_ref, w_ref, b_ref, o_ref, *, act):
    """y = act(x @ w + b).  MXU runs bf16 x bf16 -> f32; epilogue in f32."""
    x = x_ref[...].astype(jnp.bfloat16)
    w = w_ref[...].astype(jnp.bfloat16)
    y = jnp.dot(x, w, preferred_element_type=jnp.float32)
    y = y + b_ref[...]                              # f32 bias
    if act == "relu":
        y = jnp.maximum(y, 0.0)
    elif act == "leaky":
        y = jnp.where(y >= 0.0, y, 0.1 * y)
    o_ref[...] = y.astype(o_ref.dtype)


def pallas_linear(x, w, b, act=None):
    """x: [..., K], w: [K, N], b: [N] -> [..., N]; act in {None, 'relu', 'leaky'}."""
    orig_shape = x.shape
    K = orig_shape[-1]
    N = w.shape[1]
    M = int(math.prod(orig_shape[:-1]))

    x2 = x.reshape(M, K).astype(jnp.float32)
    w2 = w.astype(jnp.float32)
    b2 = b.astype(jnp.float32)

    # Lane-dense output: pad N up to a multiple of 128 at the weight level.
    Np = _round_up(N, _LANE)
    if Np != N:
        w2 = jnp.pad(w2, ((0, 0), (0, Np - N)))
        b2 = jnp.pad(b2, ((0, Np - N),))
    b2 = b2.reshape(1, Np)

    # Large M tile (multiple of 8, capped so VMEM stays comfortable on v7x 64MiB).
    TM = min(256, _round_up(M, 8))
    Mp = _round_up(M, TM)
    if Mp != M:
        x2 = jnp.pad(x2, ((0, Mp - M), (0, 0)))

    # N tile: keep the full [K, N] weight resident when modest; otherwise split N
    # and make it the slowest grid axis so a weight tile is DMA'd once and reused
    # across the whole M sweep.
    if Np <= 512:
        TN = Np
    elif Np % 256 == 0:
        TN = 256
    else:
        TN = 128

    grid = (Np // TN, Mp // TM)     # (N slowest, M fastest)

    out = pl.pallas_call(
        functools.partial(_linear_kernel, act=act),
        out_shape=jax.ShapeDtypeStruct((Mp, Np), jnp.float32),
        grid=grid,
        in_specs=[
            pl.BlockSpec((TM, K), lambda n, m: (m, 0)),
            pl.BlockSpec((K, TN), lambda n, m: (0, n)),   # depends only on n
            pl.BlockSpec((1, TN), lambda n, m: (0, n)),
        ],
        out_specs=pl.BlockSpec((TM, TN), lambda n, m: (m, n)),
        compiler_params=pltpu.CompilerParams(
            dimension_semantics=("parallel", "parallel")),
    )(x2, w2, b2)

    if Mp != M or Np != N:
        out = out[:M, :N]
    return out.reshape(orig_shape[:-1] + (N,))


def _add_layernorm_kernel(x_ref, r_ref, g_ref, b_ref, o_ref, *, eps):
    """LayerNorm(x + residual) — residual add fused into the LN kernel."""
    x = x_ref[...].astype(jnp.float32) + r_ref[...].astype(jnp.float32)
    mu = jnp.mean(x, axis=-1, keepdims=True)
    xc = x - mu
    var = jnp.mean(xc * xc, axis=-1, keepdims=True)
    y = xc * jax.lax.rsqrt(var + eps)
    o_ref[...] = (y * g_ref[...] + b_ref[...]).astype(o_ref.dtype)


def pallas_add_layernorm(x, res, gamma, beta, eps=1e-5):
    orig_shape = x.shape
    D = orig_shape[-1]
    M = int(math.prod(orig_shape[:-1]))
    x2 = x.reshape(M, D).astype(jnp.float32)
    r2 = res.reshape(M, D).astype(jnp.float32)

    TM = min(512, _round_up(M, 8))
    Mp = _round_up(M, TM)
    if Mp != M:
        x2 = jnp.pad(x2, ((0, Mp - M), (0, 0)))
        r2 = jnp.pad(r2, ((0, Mp - M), (0, 0)))

    out = pl.pallas_call(
        functools.partial(_add_layernorm_kernel, eps=eps),
        out_shape=jax.ShapeDtypeStruct((Mp, D), jnp.float32),
        grid=(Mp // TM,),
        in_specs=[
            pl.BlockSpec((TM, D), lambda i: (i, 0)),
            pl.BlockSpec((TM, D), lambda i: (i, 0)),
            pl.BlockSpec((1, D), lambda i: (0, 0)),
            pl.BlockSpec((1, D), lambda i: (0, 0)),
        ],
        out_specs=pl.BlockSpec((TM, D), lambda i: (i, 0)),
        compiler_params=pltpu.CompilerParams(dimension_semantics=("parallel",)),
    )(x2, r2, gamma.reshape(1, D).astype(jnp.float32),
      beta.reshape(1, D).astype(jnp.float32))

    if Mp != M:
        out = out[:M]
    return out.reshape(orig_shape)


def _attention_kernel(q_ref, k_ref, v_ref, o_ref, *, scale):
    """All heads of one batch item per program: refs are [H, L, dh]."""
    q = q_ref[...].astype(jnp.bfloat16)
    k = k_ref[...].astype(jnp.bfloat16)
    v = v_ref[...].astype(jnp.bfloat16)
    s = jnp.einsum("hqd,hkd->hqk", q, k,
                   preferred_element_type=jnp.float32) * scale
    m = jnp.max(s, axis=-1, keepdims=True)
    p = jnp.exp(s - m)
    denom = jnp.sum(p, axis=-1, keepdims=True)
    o = jnp.einsum("hqk,hkd->hqd", p.astype(jnp.bfloat16), v,
                   preferred_element_type=jnp.float32)
    o_ref[...] = (o * pl.reciprocal(denom, approx=True)).astype(o_ref.dtype)


def pallas_attention(q, k, v):
    """q: [B,H,Lq,dh]; k,v: [B,H,Lk,dh] -> [B,H,Lq,dh]. grid=(B,), heads packed."""
    B, H, Lq, dh = q.shape
    Lk = k.shape[2]
    scale = 1.0 / math.sqrt(dh)
    return pl.pallas_call(
        functools.partial(_attention_kernel, scale=scale),
        out_shape=jax.ShapeDtypeStruct((B, H, Lq, dh), jnp.float32),
        grid=(B,),
        in_specs=[
            pl.BlockSpec((None, H, Lq, dh), lambda b: (b, 0, 0, 0)),
            pl.BlockSpec((None, H, Lk, dh), lambda b: (b, 0, 0, 0)),
            pl.BlockSpec((None, H, Lk, dh), lambda b: (b, 0, 0, 0)),
        ],
        out_specs=pl.BlockSpec((None, H, Lq, dh), lambda b: (b, 0, 0, 0)),
        compiler_params=pltpu.CompilerParams(dimension_semantics=("parallel",)),
    )(q.astype(jnp.float32), k.astype(jnp.float32), v.astype(jnp.float32))


# ----------------------------------------------------------------------------
# Model building blocks (wrappers around the Pallas kernels)
# ----------------------------------------------------------------------------

def self_mha_forward(p, x, num_heads):
    B, L, D = x.shape
    dh = D // num_heads
    qkv = pallas_linear(x, p["qkv"]["w"], p["qkv"]["b"])          # fused [D,3D] matmul
    q, k, v = jnp.split(qkv, 3, axis=-1)
    q = q.reshape(B, L, num_heads, dh).transpose(0, 2, 1, 3)
    k = k.reshape(B, L, num_heads, dh).transpose(0, 2, 1, 3)
    v = v.reshape(B, L, num_heads, dh).transpose(0, 2, 1, 3)
    o = pallas_attention(q, k, v)
    o = o.transpose(0, 2, 1, 3).reshape(B, L, D)
    return pallas_linear(o, p["o"]["w"], p["o"]["b"])


def cross_mha_forward(p, x_q, x_kv, num_heads):
    B, Lq, D = x_q.shape
    Lk = x_kv.shape[1]
    dh = D // num_heads
    q = pallas_linear(x_q, p["q"]["w"], p["q"]["b"])
    kv = pallas_linear(x_kv, p["kv"]["w"], p["kv"]["b"])          # fused [D,2D] matmul
    k, v = jnp.split(kv, 2, axis=-1)
    q = q.reshape(B, Lq, num_heads, dh).transpose(0, 2, 1, 3)
    k = k.reshape(B, Lk, num_heads, dh).transpose(0, 2, 1, 3)
    v = v.reshape(B, Lk, num_heads, dh).transpose(0, 2, 1, 3)
    o = pallas_attention(q, k, v)
    o = o.transpose(0, 2, 1, 3).reshape(B, Lq, D)
    return pallas_linear(o, p["o"]["w"], p["o"]["b"])


def encoder_forward(layer_params, x, num_heads):
    for lp in layer_params:
        a = self_mha_forward(lp["attn"], x, num_heads)
        x = pallas_add_layernorm(x, a, lp["ln1"]["g"], lp["ln1"]["b"])
        h = pallas_linear(x, lp["ff1"]["w"], lp["ff1"]["b"], act="relu")
        h = pallas_linear(h, lp["ff2"]["w"], lp["ff2"]["b"])
        x = pallas_add_layernorm(x, h, lp["ln2"]["g"], lp["ln2"]["b"])
    return x


def cross_attn_forward(lp, x, context, num_heads):
    a = cross_mha_forward(lp["attn"], x, context, num_heads)
    return pallas_add_layernorm(x, a, lp["ln"]["g"], lp["ln"]["b"])


def mlp_forward(layers, x):
    """nn.Sequential(Linear, LeakyReLU(0.1), Linear, ...) — activation between layers."""
    for i, lp in enumerate(layers):
        act = "leaky" if i < len(layers) - 1 else None
        x = pallas_linear(x, lp["w"], lp["b"], act=act)
    return x


def expand_phonemes(features, durations, mel_len):
    """Duration-driven expansion: [B,S,D] -> [B,mel_len,D] (zeros past a batch's total)."""
    B, S, D = features.shape
    dur = durations.astype(jnp.int32)
    cum = jnp.cumsum(dur, axis=1)                                   # [B, S]
    t = jnp.arange(mel_len, dtype=jnp.int32)                        # [mel]
    idx = jnp.sum(cum[:, None, :] <= t[None, :, None], axis=-1)     # [B, mel]
    valid = t[None, :] < cum[:, -1:]
    idx_c = jnp.clip(idx, 0, S - 1)
    gathered = jnp.take_along_axis(features, idx_c[:, :, None], axis=1)
    return jnp.where(valid[:, :, None], gathered, 0.0)


# ----------------------------------------------------------------------------
# Full forward pass
# ----------------------------------------------------------------------------

def acoustic_generator_forward(params, phoneme_emb, durations, f0,
                               speaker_emb, language_emb, *,
                               model_dim, num_heads, compute_formants=False):
    B, S, D = phoneme_emb.shape
    if f0.ndim == 2:
        f0 = f0[..., None]
    mel_len = f0.shape[1]

    # Input embedding + duration embedding
    ph = pallas_linear(phoneme_emb, params["input_embedding"]["w"],
                       params["input_embedding"]["b"])
    dur_emb = pallas_linear(durations[..., None].astype(jnp.float32),
                            params["duration_adapter"]["w"],
                            params["duration_adapter"]["b"])
    ph = ph + dur_emb

    # Transformer encoder over phonemes
    encoded = encoder_forward(params["encoder"], ph, num_heads)

    # Duration-driven expansion to mel frames
    expanded = expand_phonemes(encoded, durations, mel_len)

    # Conditioning adapters
    spk_cond = mlp_forward(params["speaker_adapter"], speaker_emb)
    lang_cond = mlp_forward(params["language_adapter"], language_emb)

    mean_f0 = jnp.mean(f0, axis=1)
    f0_min = jnp.min(f0, axis=1)
    f0_max = jnp.max(f0, axis=1)
    f0_range = f0_max - f0_min
    f0_features = jnp.concatenate([mean_f0, f0_min, f0_max, f0_range], axis=-1)  # [B, 4]
    f0_features = jnp.pad(f0_features, ((0, 0), (0, 256 - f0_features.shape[-1])))
    f0_cond = mlp_forward(params["f0_adapter"], f0_features)

    combined_cond = spk_cond + lang_cond + f0_cond                        # [B, 256]
    cond_expanded = jnp.broadcast_to(combined_cond[:, None, :],
                                     (B, mel_len, combined_cond.shape[-1]))
    conditioned = jnp.concatenate([expanded, cond_expanded], axis=-1)     # [B, mel, D+256]

    # torch: F.pad(x, (0, model_dim - (D+256))) — negative pad => crop last channels.
    if conditioned.shape[-1] != model_dim:
        conditioned = conditioned[..., :model_dim]

    x = conditioned
    for lp in params["cross"]:
        x = cross_attn_forward(lp, x, encoded, num_heads)

    if compute_formants:
        # Computed-but-discarded in the torch reference; never affects mel_pred.
        _formant = mlp_forward(params["formant_tracker"], x)

    preserved = mlp_forward(params["formant_preserver"], x)               # [B, mel, 128]
    tiled = jnp.tile(preserved, (1, 1, 3))[..., : x.shape[-1]]
    final = x + tiled

    mel_pred = pallas_linear(final, params["output_proj"]["w"],
                             params["output_proj"]["b"])
    return mel_pred


# ----------------------------------------------------------------------------
# Deterministic parameter initialization (xavier_uniform weights, zero biases)
# ----------------------------------------------------------------------------

def init_params(key, model_dim, num_layers, num_heads, ffn_dim, n_cross):
    D = model_dim
    keys = iter(jax.random.split(key, 256))

    def lin(fan_in, fan_out):
        bound = math.sqrt(6.0 / (fan_in + fan_out))
        w = jax.random.uniform(next(keys), (fan_in, fan_out), jnp.float32, -bound, bound)
        return {"w": w, "b": jnp.zeros((fan_out,), jnp.float32)}

    def fuse(*ps):
        return {"w": jnp.concatenate([p["w"] for p in ps], axis=1),
                "b": jnp.concatenate([p["b"] for p in ps], axis=0)}

    def self_mha_p():
        return {"qkv": fuse(lin(D, D), lin(D, D), lin(D, D)), "o": lin(D, D)}

    def cross_mha_p():
        return {"q": lin(D, D), "kv": fuse(lin(D, D), lin(D, D)), "o": lin(D, D)}

    def ln_p():
        return {"g": jnp.ones((D,), jnp.float32), "b": jnp.zeros((D,), jnp.float32)}

    params = {
        "input_embedding": lin(D, D),
        "duration_adapter": lin(1, D),
        "encoder": [
            {"attn": self_mha_p(), "ln1": ln_p(),
             "ff1": lin(D, ffn_dim), "ff2": lin(ffn_dim, D), "ln2": ln_p()}
            for _ in range(num_layers)
        ],
        "cross": [{"attn": cross_mha_p(), "ln": ln_p()} for _ in range(n_cross)],
        "formant_tracker": [lin(D, 256), lin(256, 128), lin(128, 64)],
        "formant_preserver": [lin(D, D), lin(D, 256), lin(256, 128)],
        "speaker_adapter": [lin(512, D), lin(D, 256)],
        "language_adapter": [lin(512, D), lin(D, 256)],
        "f0_adapter": [lin(256, D), lin(D, 256)],
        "output_proj": lin(D, 80),
    }
    return params


# ----------------------------------------------------------------------------
# Demo
# ----------------------------------------------------------------------------

if __name__ == "__main__":
    model_dim, num_layers, num_heads, ffn_dim, n_cross = 32, 2, 4, 64, 2
    B, S, mel_len = 2, 8, 16

    key = jax.random.PRNGKey(0)
    k_par, k_ph, k_f0, k_spk, k_lang = jax.random.split(key, 5)

    params = init_params(k_par, model_dim, num_layers, num_heads, ffn_dim, n_cross)

    phoneme_emb = jax.random.normal(k_ph, (B, S, model_dim), jnp.float32)
    durations = jnp.array([[2, 2, 2, 2, 2, 2, 2, 2],
                           [1, 3, 2, 2, 1, 3, 2, 2]], dtype=jnp.int32)   # rows sum to mel_len
    f0 = jax.random.uniform(k_f0, (B, mel_len, 1), jnp.float32, 80.0, 400.0)
    speaker_emb = jax.random.normal(k_spk, (B, 512), jnp.float32)
    language_emb = jax.random.normal(k_lang, (B, 512), jnp.float32)

    fwd = jax.jit(functools.partial(acoustic_generator_forward,
                                    model_dim=model_dim, num_heads=num_heads))
    mel = fwd(params, phoneme_emb, durations, f0, speaker_emb, language_emb)
    mel = jax.block_until_ready(mel)
    assert mel.shape == (B, mel_len, 80), mel.shape
    assert bool(jnp.all(jnp.isfinite(mel)))
    print("KERNEL_OK")
</pallas_src>

<mosaic_0001>
module attributes {stable_mosaic.version = 11 : i64} {
  func.func @_linear_kernel(%arg0: i32, %arg1: i32, %arg2: memref<16x32xf32, #tpu.memory_space<vmem>>, %arg3: memref<32x128xf32, #tpu.memory_space<vmem>>, %arg4: memref<1x128xf32, #tpu.memory_space<vmem>>, %arg5: memref<16x128xf32, #tpu.memory_space<vmem>>) attributes {dimension_semantics = [#tpu.dimension_semantics<parallel>, #tpu.dimension_semantics<parallel>], iteration_bounds = array<i64: 1, 1>, scalar_prefetch = 0 : i64, scratch_operands = 0 : i64, tpu.core_type = #tpu.core_type<tc>, window_params = [{transform_indices = @transform_0, window_bounds = array<i64: 16, 32>}, {transform_indices = @transform_1, window_bounds = array<i64: 32, 128>}, {transform_indices = @transform_2, window_bounds = array<i64: 1, 128>}, {transform_indices = @transform_3, window_bounds = array<i64: 16, 128>}]} {
    %c0 = arith.constant 0 : index
    %c0_0 = arith.constant 0 : index
    %0 = vector.load %arg2[%c0, %c0_0] : memref<16x32xf32, #tpu.memory_space<vmem>>, vector<16x32xf32>
    %1 = arith.truncf %0 : vector<16x32xf32> to vector<16x32xbf16>
    %c0_1 = arith.constant 0 : index
    %c0_2 = arith.constant 0 : index
    %2 = vector.load %arg3[%c0_1, %c0_2] : memref<32x128xf32, #tpu.memory_space<vmem>>, vector<32x128xf32>
    %3 = arith.truncf %2 : vector<32x128xf32> to vector<32x128xbf16>
    %cst = arith.constant dense<0.000000e+00> : vector<16x128xf32>
    %4 = tpu.matmul %1, %3, %cst {dimension_numbers = #tpu.dot_dimension_numbers<[1], [0], [0], [1], [0, 0, 1, 1], [], []>} : vector<16x32xbf16>, vector<32x128xbf16>, vector<16x128xf32> -> vector<16x128xf32>
    %c0_3 = arith.constant 0 : index
    %c0_4 = arith.constant 0 : index
    %5 = vector.load %arg4[%c0_3, %c0_4] : memref<1x128xf32, #tpu.memory_space<vmem>>, vector<1x128xf32>
    %6 = vector.broadcast %5 : vector<1x128xf32> to vector<16x128xf32>
    %7 = arith.addf %4, %6 : vector<16x128xf32>
    %c0_5 = arith.constant 0 : index
    %c0_6 = arith.constant 0 : index
    %8 = vector.load %arg5[%c0_5, %c0_6] : memref<16x128xf32, #tpu.memory_space<vmem>>, vector<16x128xf32>
    tpu.vector_store %arg5[%c0_5, %c0_6], %7 {strides = array<i32>} : memref<16x128xf32, #tpu.memory_space<vmem>>, vector<16x128xf32>,
    return
  }
  func.func @transform_0(%arg0: i32, %arg1: i32) -> (i32, i32) {
    %c0_i32 = arith.constant 0 : i32
    %c0_i32_0 = arith.constant 0 : i32
    return %arg1, %c0_i32 : i32, i32
  }
  func.func @transform_1(%arg0: i32, %arg1: i32) -> (i32, i32) {
    %c0_i32 = arith.constant 0 : i32
    %c0_i32_0 = arith.constant 0 : i32
    return %c0_i32, %arg0 : i32, i32
  }
  func.func @transform_2(%arg0: i32, %arg1: i32) -> (i32, i32) {
    %c0_i32 = arith.constant 0 : i32
    %c0_i32_0 = arith.constant 0 : i32
    return %c0_i32, %arg0 : i32, i32
  }
  func.func @transform_3(%arg0: i32, %arg1: i32) -> (i32, i32) {
    %c0_i32 = arith.constant 0 : i32
    return %arg1, %arg0 : i32, i32
  }
}

module attributes {stable_mosaic.version = 11 : i64} {
  func.func @_linear_kernel(%arg0: i32, %arg1: i32, %arg2: memref<16x1xf32, #tpu.memory_space<vmem>>, %arg3: memref<1x128xf32, #tpu.memory_space<vmem>>, %arg4: memref<1x128xf32, #tpu.memory_space<vmem>>, %arg5: memref<16x128xf32, #tpu.memory_space<vmem>>) attributes {dimension_semantics = [#tpu.dimension_semantics<parallel>, #tpu.dimension_semantics<parallel>], iteration_bounds = array<i64: 1, 1>, scalar_prefetch = 0 : i64, scratch_operands = 0 : i64, tpu.core_type = #tpu.core_type<tc>, window_params = [{transform_indices = @transform_0, window_bounds = array<i64: 16, 1>}, {transform_indices = @transform_1, window_bounds = array<i64: 1, 128>}, {transform_indices = @transform_2, window_bounds = array<i64: 1, 128>}, {transform_indices = @transform_3, window_bounds = array<i64: 16, 128>}]} {
    %c0 = arith.constant 0 : index
    %c0_0 = arith.constant 0 : index
    %0 = vector.load %arg2[%c0, %c0_0] : memref<16x1xf32, #tpu.memory_space<vmem>>, vector<16x1xf32>
    %1 = arith.truncf %0 : vector<16x1xf32> to vector<16x1xbf16>
    %c0_1 = arith.constant 0 : index
    %c0_2 = arith.constant 0 : index
    %2 = vector.load %arg3[%c0_1, %c0_2] : memref<1x128xf32, #tpu.memory_space<vmem>>, vector<1x128xf32>
    %3 = arith.truncf %2 : vector<1x128xf32> to vector<1x128xbf16>
    %cst = arith.constant dense<0.000000e+00> : vector<16x128xf32>
    %4 = tpu.matmul %1, %3, %cst {dimension_numbers = #tpu.dot_dimension_numbers<[1], [0], [0], [1], [0, 0, 1, 1], [], []>} : vector<16x1xbf16>, vector<1x128xbf16>, vector<16x128xf32> -> vector<16x128xf32>
    %c0_3 = arith.constant 0 : index
    %c0_4 = arith.constant 0 : index
    %5 = vector.load %arg4[%c0_3, %c0_4] : memref<1x128xf32, #tpu.memory_space<vmem>>, vector<1x128xf32>
    %6 = vector.broadcast %5 : vector<1x128xf32> to vector<16x128xf32>
    %7 = arith.addf %4, %6 : vector<16x128xf32>
    %c0_5 = arith.constant 0 : index
    %c0_6 = arith.constant 0 : index
    %8 = vector.load %arg5[%c0_5, %c0_6] : memref<16x128xf32, #tpu.memory_space<vmem>>, vector<16x128xf32>
    tpu.vector_store %arg5[%c0_5, %c0_6], %7 {strides = array<i32>} : memref<16x128xf32, #tpu.memory_space<vmem>>, vector<16x128xf32>,
    return
  }
  func.func @transform_0(%arg0: i32, %arg1: i32) -> (i32, i32) {
    %c0_i32 = arith.constant 0 : i32
    %c0_i32_0 = arith.constant 0 : i32
    return %arg1, %c0_i32 : i32, i32
  }
  func.func @transform_1(%arg0: i32, %arg1: i32) -> (i32, i32) {
    %c0_i32 = arith.constant 0 : i32
    %c0_i32_0 = arith.constant 0 : i32
    return %c0_i32, %arg0 : i32, i32
  }
  func.func @transform_2(%arg0: i32, %arg1: i32) -> (i32, i32) {
    %c0_i32 = arith.constant 0 : i32
    %c0_i32_0 = arith.constant 0 : i32
    return %c0_i32, %arg0 : i32, i32
  }
  func.func @transform_3(%arg0: i32, %arg1: i32) -> (i32, i32) {
    %c0_i32 = arith.constant 0 : i32
    return %arg1, %arg0 : i32, i32
  }
}

module attributes {stable_mosaic.version = 11 : i64} {
  func.func @_attention_kernel(%arg0: i32, %arg1: memref<1x4x8x8xf32, #tpu.memory_space<vmem>>, %arg2: memref<1x4x8x8xf32, #tpu.memory_space<vmem>>, %arg3: memref<1x4x8x8xf32, #tpu.memory_space<vmem>>, %arg4: memref<1x4x8x8xf32, #tpu.memory_space<vmem>>) attributes {dimension_semantics = [#tpu.dimension_semantics<parallel>], iteration_bounds = array<i64: 2>, scalar_prefetch = 0 : i64, scratch_operands = 0 : i64, tpu.core_type = #tpu.core_type<tc>, window_params = [{transform_indices = @transform_0, window_bounds = array<i64: 1, 4, 8, 8>}, {transform_indices = @transform_1, window_bounds = array<i64: 1, 4, 8, 8>}, {transform_indices = @transform_2, window_bounds = array<i64: 1, 4, 8, 8>}, {transform_indices = @transform_3, window_bounds = array<i64: 1, 4, 8, 8>}]} {
    %c0 = arith.constant 0 : index
    %c0_0 = arith.constant 0 : index
    %c0_1 = arith.constant 0 : index
    %c0_2 = arith.constant 0 : index
    %0 = vector.load %arg1[%c0, %c0_0, %c0_1, %c0_2] : memref<1x4x8x8xf32, #tpu.memory_space<vmem>>, vector<1x4x8x8xf32>
    %1 = vector.shape_cast %0 : vector<1x4x8x8xf32> to vector<4x8x8xf32>
    %2 = arith.truncf %1 : vector<4x8x8xf32> to vector<4x8x8xbf16>
    %c0_3 = arith.constant 0 : index
    %c0_4 = arith.constant 0 : index
    %c0_5 = arith.constant 0 : index
    %c0_6 = arith.constant 0 : index
    %3 = vector.load %arg2[%c0_3, %c0_4, %c0_5, %c0_6] : memref<1x4x8x8xf32, #tpu.memory_space<vmem>>, vector<1x4x8x8xf32>
    %4 = vector.shape_cast %3 : vector<1x4x8x8xf32> to vector<4x8x8xf32>
    %5 = arith.truncf %4 : vector<4x8x8xf32> to vector<4x8x8xbf16>
    %c0_7 = arith.constant 0 : index
    %c0_8 = arith.constant 0 : index
    %c0_9 = arith.constant 0 : index
    %c0_10 = arith.constant 0 : index
    %6 = vector.load %arg3[%c0_7, %c0_8, %c0_9, %c0_10] : memref<1x4x8x8xf32, #tpu.memory_space<vmem>>, vector<1x4x8x8xf32>
    %7 = vector.shape_cast %6 : vector<1x4x8x8xf32> to vector<4x8x8xf32>
    %8 = arith.truncf %7 : vector<4x8x8xf32> to vector<4x8x8xbf16>
    "tpu.trace_start"() <{level = 10 : i32, message = "hqd,hkd->hqk"}> : () -> ()
    %cst = arith.constant dense<0.000000e+00> : vector<4x8x8xf32>
    %9 = tpu.matmul %2, %5, %cst {dimension_numbers = #tpu.dot_dimension_numbers<[2], [2], [1], [1], [0, 0, 0, 1, 1, 1], [0], [0]>} : vector<4x8x8xbf16>, vector<4x8x8xbf16>, vector<4x8x8xf32> -> vector<4x8x8xf32>
    "tpu.trace_stop"() : () -> ()
    %cst_11 = arith.constant 0.353553385 : f32
    %10 = vector.broadcast %cst_11 : f32 to vector<4x8x8xf32>
    %11 = arith.mulf %9, %10 : vector<4x8x8xf32>
    %cst_12 = arith.constant dense<0xFF800000> : vector<4x8xf32>
    %12 = vector.multi_reduction <maximumf>, %11, %cst_12 [2] : vector<4x8x8xf32> to vector<4x8xf32>
    %13 = vector.shape_cast %12 : vector<4x8xf32> to vector<4x8x1xf32>
    %14 = vector.broadcast %13 : vector<4x8x1xf32> to vector<4x8x8xf32>
    %15 = arith.subf %11, %14 : vector<4x8x8xf32>
    %16 = math.exp %15 : vector<4x8x8xf32>
    %cst_13 = arith.constant dense<0.000000e+00> : vector<4x8xf32>
    %17 = vector.multi_reduction <add>, %16, %cst_13 [2] : vector<4x8x8xf32> to vector<4x8xf32>
    %18 = vector.shape_cast %17 : vector<4x8xf32> to vector<4x8x1xf32>
    %19 = arith.truncf %16 : vector<4x8x8xf32> to vector<4x8x8xbf16>
    "tpu.trace_start"() <{level = 10 : i32, message = "hqk,hkd->hqd"}> : () -> ()
    %cst_14 = arith.constant dense<0.000000e+00> : vector<4x8x8xf32>
    %20 = tpu.matmul %19, %8, %cst_14 {dimension_numbers = #tpu.dot_dimension_numbers<[2], [1], [1], [2], [0, 0, 0, 1, 1, 2], [0], [0]>} : vector<4x8x8xbf16>, vector<4x8x8xbf16>, vector<4x8x8xf32> -> vector<4x8x8xf32>
    "tpu.trace_stop"() : () -> ()
    %21 = tpu.reciprocal %18 {approx = true} : vector<4x8x1xf32> -> vector<4x8x1xf32>
    %22 = vector.broadcast %21 : vector<4x8x1xf32> to vector<4x8x8xf32>
    %23 = arith.mulf %20, %22 : vector<4x8x8xf32>
    %c0_15 = arith.constant 0 : index
    %c0_16 = arith.constant 0 : index
    %c0_17 = arith.constant 0 : index
    %c0_18 = arith.constant 0 : index
    %24 = vector.load %arg4[%c0_15, %c0_16, %c0_17, %c0_18] : memref<1x4x8x8xf32, #tpu.memory_space<vmem>>, vector<1x4x8x8xf32>
    %25 = vector.shape_cast %24 : vector<1x4x8x8xf32> to vector<4x8x8xf32>
    %26 = vector.shape_cast %23 : vector<4x8x8xf32> to vector<1x4x8x8xf32>
    tpu.vector_store %arg4[%c0_15, %c0_16, %c0_17, %c0_18], %26 {strides = array<i32>} : memref<1x4x8x8xf32, #tpu.memory_space<vmem>>, vector<1x4x8x8xf32>,
    return
  }
  func.func @transform_0(%arg0: i32) -> (i32, i32, i32, i32) {
    %c0_i32 = arith.constant 0 : i32
    %c0_i32_0 = arith.constant 0 : i32
    %c0_i32_1 = arith.constant 0 : i32
    %c0_i32_2 = arith.constant 0 : i32
    return %arg0, %c0_i32, %c0_i32_0, %c0_i32_1 : i32, i32, i32, i32
  }
  func.func @transform_1(%arg0: i32) -> (i32, i32, i32, i32) {
    %c0_i32 = arith.constant 0 : i32
    %c0_i32_0 = arith.constant 0 : i32
    %c0_i32_1 = arith.constant 0 : i32
    %c0_i32_2 = arith.constant 0 : i32
    return %arg0, %c0_i32, %c0_i32_0, %c0_i32_1 : i32, i32, i32, i32
  }
  func.func @transform_2(%arg0: i32) -> (i32, i32, i32, i32) {
    %c0_i32 = arith.constant 0 : i32
    %c0_i32_0 = arith.constant 0 : i32
    %c0_i32_1 = arith.constant 0 : i32
    %c0_i32_2 = arith.constant 0 : i32
    return %arg0, %c0_i32, %c0_i32_0, %c0_i32_1 : i32, i32, i32, i32
  }
  func.func @transform_3(%arg0: i32) -> (i32, i32, i32, i32) {
    %c0_i32 = arith.constant 0 : i32
    %c0_i32_0 = arith.constant 0 : i32
    %c0_i32_1 = arith.constant 0 : i32
    %c0_i32_2 = arith.constant 0 : i32
    return %arg0, %c0_i32, %c0_i32_0, %c0_i32_1 : i32, i32, i32, i32
  }
}

module attributes {stable_mosaic.version = 11 : i64} {
  func.func @_add_layernorm_kernel(%arg0: i32, %arg1: memref<16x32xf32, #tpu.memory_space<vmem>>, %arg2: memref<16x32xf32, #tpu.memory_space<vmem>>, %arg3: memref<1x32xf32, #tpu.memory_space<vmem>>, %arg4: memref<1x32xf32, #tpu.memory_space<vmem>>, %arg5: memref<16x32xf32, #tpu.memory_space<vmem>>) attributes {dimension_semantics = [#tpu.dimension_semantics<parallel>], iteration_bounds = array<i64: 1>, scalar_prefetch = 0 : i64, scratch_operands = 0 : i64, tpu.core_type = #tpu.core_type<tc>, window_params = [{transform_indices = @transform_0, window_bounds = array<i64: 16, 32>}, {transform_indices = @transform_1, window_bounds = array<i64: 16, 32>}, {pipeline_mode = #tpu.pipeline_mode<synchronous>, transform_indices = @transform_2, window_bounds = array<i64: 1, 32>}, {pipeline_mode = #tpu.pipeline_mode<synchronous>, transform_indices = @transform_3, window_bounds = array<i64: 1, 32>}, {transform_indices = @transform_4, window_bounds = array<i64: 16, 32>}]} {
    %c0 = arith.constant 0 : index
    %c0_0 = arith.constant 0 : index
    %0 = vector.load %arg1[%c0, %c0_0] : memref<16x32xf32, #tpu.memory_space<vmem>>, vector<16x32xf32>
    %c0_1 = arith.constant 0 : index
    %c0_2 = arith.constant 0 : index
    %1 = vector.load %arg2[%c0_1, %c0_2] : memref<16x32xf32, #tpu.memory_space<vmem>>, vector<16x32xf32>
    %2 = arith.addf %0, %1 : vector<16x32xf32>
    %cst = arith.constant dense<0.000000e+00> : vector<16xf32>
    %3 = vector.multi_reduction <add>, %2, %cst [1] : vector<16x32xf32> to vector<16xf32>
    %4 = vector.shape_cast %3 : vector<16xf32> to vector<16x1xf32>
    %cst_3 = arith.constant 3.200000e+01 : f32
    %5 = vector.broadcast %cst_3 : f32 to vector<16x1xf32>
    %6 = arith.divf %4, %5 : vector<16x1xf32>
    %7 = vector.broadcast %6 : vector<16x1xf32> to vector<16x32xf32>
    %8 = arith.subf %2, %7 : vector<16x32xf32>
    %9 = arith.mulf %8, %8 : vector<16x32xf32>
    %cst_4 = arith.constant dense<0.000000e+00> : vector<16xf32>
    %10 = vector.multi_reduction <add>, %9, %cst_4 [1] : vector<16x32xf32> to vector<16xf32>
    %11 = vector.shape_cast %10 : vector<16xf32> to vector<16x1xf32>
    %cst_5 = arith.constant 3.200000e+01 : f32
    %12 = vector.broadcast %cst_5 : f32 to vector<16x1xf32>
    %13 = arith.divf %11, %12 : vector<16x1xf32>
    %cst_6 = arith.constant 9.99999974E-6 : f32
    %14 = vector.broadcast %cst_6 : f32 to vector<16x1xf32>
    %15 = arith.addf %13, %14 : vector<16x1xf32>
    %16 = math.rsqrt %15 : vector<16x1xf32>
    %17 = vector.broadcast %16 : vector<16x1xf32> to vector<16x32xf32>
    %18 = arith.mulf %8, %17 : vector<16x32xf32>
    %c0_7 = arith.constant 0 : index
    %c0_8 = arith.constant 0 : index
    %19 = vector.load %arg3[%c0_7, %c0_8] : memref<1x32xf32, #tpu.memory_space<vmem>>, vector<1x32xf32>
    %20 = vector.broadcast %19 : vector<1x32xf32> to vector<16x32xf32>
    %21 = arith.mulf %18, %20 : vector<16x32xf32>
    %c0_9 = arith.constant 0 : index
    %c0_10 = arith.constant 0 : index
    %22 = vector.load %arg4[%c0_9, %c0_10] : memref<1x32xf32, #tpu.memory_space<vmem>>, vector<1x32xf32>
    %23 = vector.broadcast %22 : vector<1x32xf32> to vector<16x32xf32>
    %24 = arith.addf %21, %23 : vector<16x32xf32>
    %c0_11 = arith.constant 0 : index
    %c0_12 = arith.constant 0 : index
    %25 = vector.load %arg5[%c0_11, %c0_12] : memref<16x32xf32, #tpu.memory_space<vmem>>, vector<16x32xf32>
    tpu.vector_store %arg5[%c0_11, %c0_12], %24 {strides = array<i32>} : memref<16x32xf32, #tpu.memory_space<vmem>>, vector<16x32xf32>,
    return
  }
  func.func @transform_0(%arg0: i32) -> (i32, i32) {
    %c0_i32 = arith.constant 0 : i32
    %c0_i32_0 = arith.constant 0 : i32
    return %arg0, %c0_i32 : i32, i32
  }
  func.func @transform_1(%arg0: i32) -> (i32, i32) {
    %c0_i32 = arith.constant 0 : i32
    %c0_i32_0 = arith.constant 0 : i32
    return %arg0, %c0_i32 : i32, i32
  }
  func.func @transform_2(%arg0: i32) -> (i32, i32) {
    %c0_i32 = arith.constant 0 : i32
    %c0_i32_0 = arith.constant 0 : i32
    %c0_i32_1 = arith.constant 0 : i32
    return %c0_i32, %c0_i32_0 : i32, i32
  }
  func.func @transform_3(%arg0: i32) -> (i32, i32) {
    %c0_i32 = arith.constant 0 : i32
    %c0_i32_0 = arith.constant 0 : i32
    %c0_i32_1 = arith.constant 0 : i32
    return %c0_i32, %c0_i32_0 : i32, i32
  }
  func.func @transform_4(%arg0: i32) -> (i32, i32) {
    %c0_i32 = arith.constant 0 : i32
    %c0_i32_0 = arith.constant 0 : i32
    return %arg0, %c0_i32 : i32, i32
  }
}

module attributes {stable_mosaic.version = 11 : i64} {
  func.func @_linear_kernel(%arg0: i32, %arg1: i32, %arg2: memref<16x32xf32, #tpu.memory_space<vmem>>, %arg3: memref<32x128xf32, #tpu.memory_space<vmem>>, %arg4: memref<1x128xf32, #tpu.memory_space<vmem>>, %arg5: memref<16x128xf32, #tpu.memory_space<vmem>>) attributes {dimension_semantics = [#tpu.dimension_semantics<parallel>, #tpu.dimension_semantics<parallel>], iteration_bounds = array<i64: 1, 1>, scalar_prefetch = 0 : i64, scratch_operands = 0 : i64, tpu.core_type = #tpu.core_type<tc>, window_params = [{transform_indices = @transform_0, window_bounds = array<i64: 16, 32>}, {transform_indices = @transform_1, window_bounds = array<i64: 32, 128>}, {transform_indices = @transform_2, window_bounds = array<i64: 1, 128>}, {transform_indices = @transform_3, window_bounds = array<i64: 16, 128>}]} {
    %c0 = arith.constant 0 : index
    %c0_0 = arith.constant 0 : index
    %0 = vector.load %arg2[%c0, %c0_0] : memref<16x32xf32, #tpu.memory_space<vmem>>, vector<16x32xf32>
    %1 = arith.truncf %0 : vector<16x32xf32> to vector<16x32xbf16>
    %c0_1 = arith.constant 0 : index
    %c0_2 = arith.constant 0 : index
    %2 = vector.load %arg3[%c0_1, %c0_2] : memref<32x128xf32, #tpu.memory_space<vmem>>, vector<32x128xf32>
    %3 = arith.truncf %2 : vector<32x128xf32> to vector<32x128xbf16>
    %cst = arith.constant dense<0.000000e+00> : vector<16x128xf32>
    %4 = tpu.matmul %1, %3, %cst {dimension_numbers = #tpu.dot_dimension_numbers<[1], [0], [0], [1], [0, 0, 1, 1], [], []>} : vector<16x32xbf16>, vector<32x128xbf16>, vector<16x128xf32> -> vector<16x128xf32>
    %c0_3 = arith.constant 0 : index
    %c0_4 = arith.constant 0 : index
    %5 = vector.load %arg4[%c0_3, %c0_4] : memref<1x128xf32, #tpu.memory_space<vmem>>, vector<1x128xf32>
    %6 = vector.broadcast %5 : vector<1x128xf32> to vector<16x128xf32>
    %7 = arith.addf %4, %6 : vector<16x128xf32>
    %cst_5 = arith.constant 0.000000e+00 : f32
    %8 = vector.broadcast %cst_5 : f32 to vector<16x128xf32>
    %9 = arith.maximumf %7, %8 : vector<16x128xf32>
    %c0_6 = arith.constant 0 : index
    %c0_7 = arith.constant 0 : index
    %10 = vector.load %arg5[%c0_6, %c0_7] : memref<16x128xf32, #tpu.memory_space<vmem>>, vector<16x128xf32>
    tpu.vector_store %arg5[%c0_6, %c0_7], %9 {strides = array<i32>} : memref<16x128xf32, #tpu.memory_space<vmem>>, vector<16x128xf32>,
    return
  }
  func.func @transform_0(%arg0: i32, %arg1: i32) -> (i32, i32) {
    %c0_i32 = arith.constant 0 : i32
    %c0_i32_0 = arith.constant 0 : i32
    return %arg1, %c0_i32 : i32, i32
  }
  func.func @transform_1(%arg0: i32, %arg1: i32) -> (i32, i32) {
    %c0_i32 = arith.constant 0 : i32
    %c0_i32_0 = arith.constant 0 : i32
    return %c0_i32, %arg0 : i32, i32
  }
  func.func @transform_2(%arg0: i32, %arg1: i32) -> (i32, i32) {
    %c0_i32 = arith.constant 0 : i32
    %c0_i32_0 = arith.constant 0 : i32
    return %c0_i32, %arg0 : i32, i32
  }
  func.func @transform_3(%arg0: i32, %arg1: i32) -> (i32, i32) {
    %c0_i32 = arith.constant 0 : i32
    return %arg1, %arg0 : i32, i32
  }
}

module attributes {stable_mosaic.version = 11 : i64} {
  func.func @_linear_kernel(%arg0: i32, %arg1: i32, %arg2: memref<16x64xf32, #tpu.memory_space<vmem>>, %arg3: memref<64x128xf32, #tpu.memory_space<vmem>>, %arg4: memref<1x128xf32, #tpu.memory_space<vmem>>, %arg5: memref<16x128xf32, #tpu.memory_space<vmem>>) attributes {dimension_semantics = [#tpu.dimension_semantics<parallel>, #tpu.dimension_semantics<parallel>], iteration_bounds = array<i64: 1, 1>, scalar_prefetch = 0 : i64, scratch_operands = 0 : i64, tpu.core_type = #tpu.core_type<tc>, window_params = [{transform_indices = @transform_0, window_bounds = array<i64: 16, 64>}, {transform_indices = @transform_1, window_bounds = array<i64: 64, 128>}, {transform_indices = @transform_2, window_bounds = array<i64: 1, 128>}, {transform_indices = @transform_3, window_bounds = array<i64: 16, 128>}]} {
    %c0 = arith.constant 0 : index
    %c0_0 = arith.constant 0 : index
    %0 = vector.load %arg2[%c0, %c0_0] : memref<16x64xf32, #tpu.memory_space<vmem>>, vector<16x64xf32>
    %1 = arith.truncf %0 : vector<16x64xf32> to vector<16x64xbf16>
    %c0_1 = arith.constant 0 : index
    %c0_2 = arith.constant 0 : index
    %2 = vector.load %arg3[%c0_1, %c0_2] : memref<64x128xf32, #tpu.memory_space<vmem>>, vector<64x128xf32>
    %3 = arith.truncf %2 : vector<64x128xf32> to vector<64x128xbf16>
    %cst = arith.constant dense<0.000000e+00> : vector<16x128xf32>
    %4 = tpu.matmul %1, %3, %cst {dimension_numbers = #tpu.dot_dimension_numbers<[1], [0], [0], [1], [0, 0, 1, 1], [], []>} : vector<16x64xbf16>, vector<64x128xbf16>, vector<16x128xf32> -> vector<16x128xf32>
    %c0_3 = arith.constant 0 : index
    %c0_4 = arith.constant 0 : index
    %5 = vector.load %arg4[%c0_3, %c0_4] : memref<1x128xf32, #tpu.memory_space<vmem>>, vector<1x128xf32>
    %6 = vector.broadcast %5 : vector<1x128xf32> to vector<16x128xf32>
    %7 = arith.addf %4, %6 : vector<16x128xf32>
    %c0_5 = arith.constant 0 : index
    %c0_6 = arith.constant 0 : index
    %8 = vector.load %arg5[%c0_5, %c0_6] : memref<16x128xf32, #tpu.memory_space<vmem>>, vector<16x128xf32>
    tpu.vector_store %arg5[%c0_5, %c0_6], %7 {strides = array<i32>} : memref<16x128xf32, #tpu.memory_space<vmem>>, vector<16x128xf32>,
    return
  }
  func.func @transform_0(%arg0: i32, %arg1: i32) -> (i32, i32) {
    %c0_i32 = arith.constant 0 : i32
    %c0_i32_0 = arith.constant 0 : i32
    return %arg1, %c0_i32 : i32, i32
  }
  func.func @transform_1(%arg0: i32, %arg1: i32) -> (i32, i32) {
    %c0_i32 = arith.constant 0 : i32
    %c0_i32_0 = arith.constant 0 : i32
    return %c0_i32, %arg0 : i32, i32
  }
  func.func @transform_2(%arg0: i32, %arg1: i32) -> (i32, i32) {
    %c0_i32 = arith.constant 0 : i32
    %c0_i32_0 = arith.constant 0 : i32
    return %c0_i32, %arg0 : i32, i32
  }
  func.func @transform_3(%arg0: i32, %arg1: i32) -> (i32, i32) {
    %c0_i32 = arith.constant 0 : i32
    return %arg1, %arg0 : i32, i32
  }
}

module attributes {stable_mosaic.version = 11 : i64} {
  func.func @_linear_kernel(%arg0: i32, %arg1: i32, %arg2: memref<32x32xf32, #tpu.memory_space<vmem>>, %arg3: memref<32x128xf32, #tpu.memory_space<vmem>>, %arg4: memref<1x128xf32, #tpu.memory_space<vmem>>, %arg5: memref<32x128xf32, #tpu.memory_space<vmem>>) attributes {dimension_semantics = [#tpu.dimension_semantics<parallel>, #tpu.dimension_semantics<parallel>], iteration_bounds = array<i64: 1, 1>, scalar_prefetch = 0 : i64, scratch_operands = 0 : i64, tpu.core_type = #tpu.core_type<tc>, window_params = [{transform_indices = @transform_0, window_bounds = array<i64: 32, 32>}, {transform_indices = @transform_1, window_bounds = array<i64: 32, 128>}, {transform_indices = @transform_2, window_bounds = array<i64: 1, 128>}, {transform_indices = @transform_3, window_bounds = array<i64: 32, 128>}]} {
    %c0 = arith.constant 0 : index
    %c0_0 = arith.constant 0 : index
    %0 = vector.load %arg2[%c0, %c0_0] : memref<32x32xf32, #tpu.memory_space<vmem>>, vector<32x32xf32>
    %1 = arith.truncf %0 : vector<32x32xf32> to vector<32x32xbf16>
    %c0_1 = arith.constant 0 : index
    %c0_2 = arith.constant 0 : index
    %2 = vector.load %arg3[%c0_1, %c0_2] : memref<32x128xf32, #tpu.memory_space<vmem>>, vector<32x128xf32>
    %3 = arith.truncf %2 : vector<32x128xf32> to vector<32x128xbf16>
    %cst = arith.constant dense<0.000000e+00> : vector<32x128xf32>
    %4 = tpu.matmul %1, %3, %cst {dimension_numbers = #tpu.dot_dimension_numbers<[1], [0], [0], [1], [0, 0, 1, 1], [], []>} : vector<32x32xbf16>, vector<32x128xbf16>, vector<32x128xf32> -> vector<32x128xf32>
    %c0_3 = arith.constant 0 : index
    %c0_4 = arith.constant 0 : index
    %5 = vector.load %arg4[%c0_3, %c0_4] : memref<1x128xf32, #tpu.memory_space<vmem>>, vector<1x128xf32>
    %6 = vector.broadcast %5 : vector<1x128xf32> to vector<32x128xf32>
    %7 = arith.addf %4, %6 : vector<32x128xf32>
    %c0_5 = arith.constant 0 : index
    %c0_6 = arith.constant 0 : index
    %8 = vector.load %arg5[%c0_5, %c0_6] : memref<32x128xf32, #tpu.memory_space<vmem>>, vector<32x128xf32>
    tpu.vector_store %arg5[%c0_5, %c0_6], %7 {strides = array<i32>} : memref<32x128xf32, #tpu.memory_space<vmem>>, vector<32x128xf32>,
    return
  }
  func.func @transform_0(%arg0: i32, %arg1: i32) -> (i32, i32) {
    %c0_i32 = arith.constant 0 : i32
    %c0_i32_0 = arith.constant 0 : i32
    return %arg1, %c0_i32 : i32, i32
  }
  func.func @transform_1(%arg0: i32, %arg1: i32) -> (i32, i32) {
    %c0_i32 = arith.constant 0 : i32
    %c0_i32_0 = arith.constant 0 : i32
    return %c0_i32, %arg0 : i32, i32
  }
  func.func @transform_2(%arg0: i32, %arg1: i32) -> (i32, i32) {
    %c0_i32 = arith.constant 0 : i32
    %c0_i32_0 = arith.constant 0 : i32
    return %c0_i32, %arg0 : i32, i32
  }
  func.func @transform_3(%arg0: i32, %arg1: i32) -> (i32, i32) {
    %c0_i32 = arith.constant 0 : i32
    return %arg1, %arg0 : i32, i32
  }
}

module attributes {stable_mosaic.version = 11 : i64} {
  func.func @_attention_kernel(%arg0: i32, %arg1: memref<1x4x16x8xf32, #tpu.memory_space<vmem>>, %arg2: memref<1x4x8x8xf32, #tpu.memory_space<vmem>>, %arg3: memref<1x4x8x8xf32, #tpu.memory_space<vmem>>, %arg4: memref<1x4x16x8xf32, #tpu.memory_space<vmem>>) attributes {dimension_semantics = [#tpu.dimension_semantics<parallel>], iteration_bounds = array<i64: 2>, scalar_prefetch = 0 : i64, scratch_operands = 0 : i64, tpu.core_type = #tpu.core_type<tc>, window_params = [{transform_indices = @transform_0, window_bounds = array<i64: 1, 4, 16, 8>}, {transform_indices = @transform_1, window_bounds = array<i64: 1, 4, 8, 8>}, {transform_indices = @transform_2, window_bounds = array<i64: 1, 4, 8, 8>}, {transform_indices = @transform_3, window_bounds = array<i64: 1, 4, 16, 8>}]} {
    %c0 = arith.constant 0 : index
    %c0_0 = arith.constant 0 : index
    %c0_1 = arith.constant 0 : index
    %c0_2 = arith.constant 0 : index
    %0 = vector.load %arg1[%c0, %c0_0, %c0_1, %c0_2] : memref<1x4x16x8xf32, #tpu.memory_space<vmem>>, vector<1x4x16x8xf32>
    %1 = vector.shape_cast %0 : vector<1x4x16x8xf32> to vector<4x16x8xf32>
    %2 = arith.truncf %1 : vector<4x16x8xf32> to vector<4x16x8xbf16>
    %c0_3 = arith.constant 0 : index
    %c0_4 = arith.constant 0 : index
    %c0_5 = arith.constant 0 : index
    %c0_6 = arith.constant 0 : index
    %3 = vector.load %arg2[%c0_3, %c0_4, %c0_5, %c0_6] : memref<1x4x8x8xf32, #tpu.memory_space<vmem>>, vector<1x4x8x8xf32>
    %4 = vector.shape_cast %3 : vector<1x4x8x8xf32> to vector<4x8x8xf32>
    %5 = arith.truncf %4 : vector<4x8x8xf32> to vector<4x8x8xbf16>
    %c0_7 = arith.constant 0 : index
    %c0_8 = arith.constant 0 : index
    %c0_9 = arith.constant 0 : index
    %c0_10 = arith.constant 0 : index
    %6 = vector.load %arg3[%c0_7, %c0_8, %c0_9, %c0_10] : memref<1x4x8x8xf32, #tpu.memory_space<vmem>>, vector<1x4x8x8xf32>
    %7 = vector.shape_cast %6 : vector<1x4x8x8xf32> to vector<4x8x8xf32>
    %8 = arith.truncf %7 : vector<4x8x8xf32> to vector<4x8x8xbf16>
    "tpu.trace_start"() <{level = 10 : i32, message = "hqd,hkd->hqk"}> : () -> ()
    %cst = arith.constant dense<0.000000e+00> : vector<4x16x8xf32>
    %9 = tpu.matmul %2, %5, %cst {dimension_numbers = #tpu.dot_dimension_numbers<[2], [2], [1], [1], [0, 0, 0, 1, 1, 1], [0], [0]>} : vector<4x16x8xbf16>, vector<4x8x8xbf16>, vector<4x16x8xf32> -> vector<4x16x8xf32>
    "tpu.trace_stop"() : () -> ()
    %cst_11 = arith.constant 0.353553385 : f32
    %10 = vector.broadcast %cst_11 : f32 to vector<4x16x8xf32>
    %11 = arith.mulf %9, %10 : vector<4x16x8xf32>
    %cst_12 = arith.constant dense<0xFF800000> : vector<4x16xf32>
    %12 = vector.multi_reduction <maximumf>, %11, %cst_12 [2] : vector<4x16x8xf32> to vector<4x16xf32>
    %13 = vector.shape_cast %12 : vector<4x16xf32> to vector<4x16x1xf32>
    %14 = vector.broadcast %13 : vector<4x16x1xf32> to vector<4x16x8xf32>
    %15 = arith.subf %11, %14 : vector<4x16x8xf32>
    %16 = math.exp %15 : vector<4x16x8xf32>
    %cst_13 = arith.constant dense<0.000000e+00> : vector<4x16xf32>
    %17 = vector.multi_reduction <add>, %16, %cst_13 [2] : vector<4x16x8xf32> to vector<4x16xf32>
    %18 = vector.shape_cast %17 : vector<4x16xf32> to vector<4x16x1xf32>
    %19 = arith.truncf %16 : vector<4x16x8xf32> to vector<4x16x8xbf16>
    "tpu.trace_start"() <{level = 10 : i32, message = "hqk,hkd->hqd"}> : () -> ()
    %cst_14 = arith.constant dense<0.000000e+00> : vector<4x16x8xf32>
    %20 = tpu.matmul %19, %8, %cst_14 {dimension_numbers = #tpu.dot_dimension_numbers<[2], [1], [1], [2], [0, 0, 0, 1, 1, 2], [0], [0]>} : vector<4x16x8xbf16>, vector<4x8x8xbf16>, vector<4x16x8xf32> -> vector<4x16x8xf32>
    "tpu.trace_stop"() : () -> ()
    %21 = tpu.reciprocal %18 {approx = true} : vector<4x16x1xf32> -> vector<4x16x1xf32>
    %22 = vector.broadcast %21 : vector<4x16x1xf32> to vector<4x16x8xf32>
    %23 = arith.mulf %20, %22 : vector<4x16x8xf32>
    %c0_15 = arith.constant 0 : index
    %c0_16 = arith.constant 0 : index
    %c0_17 = arith.constant 0 : index
    %c0_18 = arith.constant 0 : index
    %24 = vector.load %arg4[%c0_15, %c0_16, %c0_17, %c0_18] : memref<1x4x16x8xf32, #tpu.memory_space<vmem>>, vector<1x4x16x8xf32>
    %25 = vector.shape_cast %24 : vector<1x4x16x8xf32> to vector<4x16x8xf32>
    %26 = vector.shape_cast %23 : vector<4x16x8xf32> to vector<1x4x16x8xf32>
    tpu.vector_store %arg4[%c0_15, %c0_16, %c0_17, %c0_18], %26 {strides = array<i32>} : memref<1x4x16x8xf32, #tpu.memory_space<vmem>>, vector<1x4x16x8xf32>,
    return
  }
  func.func @transform_0(%arg0: i32) -> (i32, i32, i32, i32) {
    %c0_i32 = arith.constant 0 : i32
    %c0_i32_0 = arith.constant 0 : i32
    %c0_i32_1 = arith.constant 0 : i32
    %c0_i32_2 = arith.constant 0 : i32
    return %arg0, %c0_i32, %c0_i32_0, %c0_i32_1 : i32, i32, i32, i32
  }
  func.func @transform_1(%arg0: i32) -> (i32, i32, i32, i32) {
    %c0_i32 = arith.constant 0 : i32
    %c0_i32_0 = arith.constant 0 : i32
    %c0_i32_1 = arith.constant 0 : i32
    %c0_i32_2 = arith.constant 0 : i32
    return %arg0, %c0_i32, %c0_i32_0, %c0_i32_1 : i32, i32, i32, i32
  }
  func.func @transform_2(%arg0: i32) -> (i32, i32, i32, i32) {
    %c0_i32 = arith.constant 0 : i32
    %c0_i32_0 = arith.constant 0 : i32
    %c0_i32_1 = arith.constant 0 : i32
    %c0_i32_2 = arith.constant 0 : i32
    return %arg0, %c0_i32, %c0_i32_0, %c0_i32_1 : i32, i32, i32, i32
  }
  func.func @transform_3(%arg0: i32) -> (i32, i32, i32, i32) {
    %c0_i32 = arith.constant 0 : i32
    %c0_i32_0 = arith.constant 0 : i32
    %c0_i32_1 = arith.constant 0 : i32
    %c0_i32_2 = arith.constant 0 : i32
    return %arg0, %c0_i32, %c0_i32_0, %c0_i32_1 : i32, i32, i32, i32
  }
}

module attributes {stable_mosaic.version = 11 : i64} {
  func.func @_add_layernorm_kernel(%arg0: i32, %arg1: memref<32x32xf32, #tpu.memory_space<vmem>>, %arg2: memref<32x32xf32, #tpu.memory_space<vmem>>, %arg3: memref<1x32xf32, #tpu.memory_space<vmem>>, %arg4: memref<1x32xf32, #tpu.memory_space<vmem>>, %arg5: memref<32x32xf32, #tpu.memory_space<vmem>>) attributes {dimension_semantics = [#tpu.dimension_semantics<parallel>], iteration_bounds = array<i64: 1>, scalar_prefetch = 0 : i64, scratch_operands = 0 : i64, tpu.core_type = #tpu.core_type<tc>, window_params = [{transform_indices = @transform_0, window_bounds = array<i64: 32, 32>}, {transform_indices = @transform_1, window_bounds = array<i64: 32, 32>}, {pipeline_mode = #tpu.pipeline_mode<synchronous>, transform_indices = @transform_2, window_bounds = array<i64: 1, 32>}, {pipeline_mode = #tpu.pipeline_mode<synchronous>, transform_indices = @transform_3, window_bounds = array<i64: 1, 32>}, {transform_indices = @transform_4, window_bounds = array<i64: 32, 32>}]} {
    %c0 = arith.constant 0 : index
    %c0_0 = arith.constant 0 : index
    %0 = vector.load %arg1[%c0, %c0_0] : memref<32x32xf32, #tpu.memory_space<vmem>>, vector<32x32xf32>
    %c0_1 = arith.constant 0 : index
    %c0_2 = arith.constant 0 : index
    %1 = vector.load %arg2[%c0_1, %c0_2] : memref<32x32xf32, #tpu.memory_space<vmem>>, vector<32x32xf32>
    %2 = arith.addf %0, %1 : vector<32x32xf32>
    %cst = arith.constant dense<0.000000e+00> : vector<32xf32>
    %3 = vector.multi_reduction <add>, %2, %cst [1] : vector<32x32xf32> to vector<32xf32>
    %4 = vector.shape_cast %3 : vector<32xf32> to vector<32x1xf32>
    %cst_3 = arith.constant 3.200000e+01 : f32
    %5 = vector.broadcast %cst_3 : f32 to vector<32x1xf32>
    %6 = arith.divf %4, %5 : vector<32x1xf32>
    %7 = vector.broadcast %6 : vector<32x1xf32> to vector<32x32xf32>
    %8 = arith.subf %2, %7 : vector<32x32xf32>
    %9 = arith.mulf %8, %8 : vector<32x32xf32>
    %cst_4 = arith.constant dense<0.000000e+00> : vector<32xf32>
    %10 = vector.multi_reduction <add>, %9, %cst_4 [1] : vector<32x32xf32> to vector<32xf32>
    %11 = vector.shape_cast %10 : vector<32xf32> to vector<32x1xf32>
    %cst_5 = arith.constant 3.200000e+01 : f32
    %12 = vector.broadcast %cst_5 : f32 to vector<32x1xf32>
    %13 = arith.divf %11, %12 : vector<32x1xf32>
    %cst_6 = arith.constant 9.99999974E-6 : f32
    %14 = vector.broadcast %cst_6 : f32 to vector<32x1xf32>
    %15 = arith.addf %13, %14 : vector<32x1xf32>
    %16 = math.rsqrt %15 : vector<32x1xf32>
    %17 = vector.broadcast %16 : vector<32x1xf32> to vector<32x32xf32>
    %18 = arith.mulf %8, %17 : vector<32x32xf32>
    %c0_7 = arith.constant 0 : index
    %c0_8 = arith.constant 0 : index
    %19 = vector.load %arg3[%c0_7, %c0_8] : memref<1x32xf32, #tpu.memory_space<vmem>>, vector<1x32xf32>
    %20 = vector.broadcast %19 : vector<1x32xf32> to vector<32x32xf32>
    %21 = arith.mulf %18, %20 : vector<32x32xf32>
    %c0_9 = arith.constant 0 : index
    %c0_10 = arith.constant 0 : index
    %22 = vector.load %arg4[%c0_9, %c0_10] : memref<1x32xf32, #tpu.memory_space<vmem>>, vector<1x32xf32>
    %23 = vector.broadcast %22 : vector<1x32xf32> to vector<32x32xf32>
    %24 = arith.addf %21, %23 : vector<32x32xf32>
    %c0_11 = arith.constant 0 : index
    %c0_12 = arith.constant 0 : index
    %25 = vector.load %arg5[%c0_11, %c0_12] : memref<32x32xf32, #tpu.memory_space<vmem>>, vector<32x32xf32>
    tpu.vector_store %arg5[%c0_11, %c0_12], %24 {strides = array<i32>} : memref<32x32xf32, #tpu.memory_space<vmem>>, vector<32x32xf32>,
    return
  }
  func.func @transform_0(%arg0: i32) -> (i32, i32) {
    %c0_i32 = arith.constant 0 : i32
    %c0_i32_0 = arith.constant 0 : i32
    return %arg0, %c0_i32 : i32, i32
  }
  func.func @transform_1(%arg0: i32) -> (i32, i32) {
    %c0_i32 = arith.constant 0 : i32
    %c0_i32_0 = arith.constant 0 : i32
    return %arg0, %c0_i32 : i32, i32
  }
  func.func @transform_2(%arg0: i32) -> (i32, i32) {
    %c0_i32 = arith.constant 0 : i32
    %c0_i32_0 = arith.constant 0 : i32
    %c0_i32_1 = arith.constant 0 : i32
    return %c0_i32, %c0_i32_0 : i32, i32
  }
  func.func @transform_3(%arg0: i32) -> (i32, i32) {
    %c0_i32 = arith.constant 0 : i32
    %c0_i32_0 = arith.constant 0 : i32
    %c0_i32_1 = arith.constant 0 : i32
    return %c0_i32, %c0_i32_0 : i32, i32
  }
  func.func @transform_4(%arg0: i32) -> (i32, i32) {
    %c0_i32 = arith.constant 0 : i32
    %c0_i32_0 = arith.constant 0 : i32
    return %arg0, %c0_i32 : i32, i32
  }
}

module attributes {stable_mosaic.version = 11 : i64} {
  func.func @_linear_kernel(%arg0: i32, %arg1: i32, %arg2: memref<32x32xf32, #tpu.memory_space<vmem>>, %arg3: memref<32x128xf32, #tpu.memory_space<vmem>>, %arg4: memref<1x128xf32, #tpu.memory_space<vmem>>, %arg5: memref<32x128xf32, #tpu.memory_space<vmem>>) attributes {dimension_semantics = [#tpu.dimension_semantics<parallel>, #tpu.dimension_semantics<parallel>], iteration_bounds = array<i64: 1, 1>, scalar_prefetch = 0 : i64, scratch_operands = 0 : i64, tpu.core_type = #tpu.core_type<tc>, window_params = [{transform_indices = @transform_0, window_bounds = array<i64: 32, 32>}, {transform_indices = @transform_1, window_bounds = array<i64: 32, 128>}, {transform_indices = @transform_2, window_bounds = array<i64: 1, 128>}, {transform_indices = @transform_3, window_bounds = array<i64: 32, 128>}]} {
    %c0 = arith.constant 0 : index
    %c0_0 = arith.constant 0 : index
    %0 = vector.load %arg2[%c0, %c0_0] : memref<32x32xf32, #tpu.memory_space<vmem>>, vector<32x32xf32>
    %1 = arith.truncf %0 : vector<32x32xf32> to vector<32x32xbf16>
    %c0_1 = arith.constant 0 : index
    %c0_2 = arith.constant 0 : index
    %2 = vector.load %arg3[%c0_1, %c0_2] : memref<32x128xf32, #tpu.memory_space<vmem>>, vector<32x128xf32>
    %3 = arith.truncf %2 : vector<32x128xf32> to vector<32x128xbf16>
    %cst = arith.constant dense<0.000000e+00> : vector<32x128xf32>
    %4 = tpu.matmul %1, %3, %cst {dimension_numbers = #tpu.dot_dimension_numbers<[1], [0], [0], [1], [0, 0, 1, 1], [], []>} : vector<32x32xbf16>, vector<32x128xbf16>, vector<32x128xf32> -> vector<32x128xf32>
    %c0_3 = arith.constant 0 : index
    %c0_4 = arith.constant 0 : index
    %5 = vector.load %arg4[%c0_3, %c0_4] : memref<1x128xf32, #tpu.memory_space<vmem>>, vector<1x128xf32>
    %6 = vector.broadcast %5 : vector<1x128xf32> to vector<32x128xf32>
    %7 = arith.addf %4, %6 : vector<32x128xf32>
    %cst_5 = arith.constant 0.000000e+00 : f32
    %8 = vector.broadcast %cst_5 : f32 to vector<32x128xf32>
    %9 = arith.cmpf oge, %7, %8 : vector<32x128xf32>
    %cst_6 = arith.constant 1.000000e-01 : f32
    %10 = vector.broadcast %cst_6 : f32 to vector<32x128xf32>
    %11 = arith.mulf %10, %7 : vector<32x128xf32>
    %12 = arith.select %9, %7, %11 : vector<32x128xi1>, vector<32x128xf32>
    %c0_7 = arith.constant 0 : index
    %c0_8 = arith.constant 0 : index
    %13 = vector.load %arg5[%c0_7, %c0_8] : memref<32x128xf32, #tpu.memory_space<vmem>>, vector<32x128xf32>
    tpu.vector_store %arg5[%c0_7, %c0_8], %12 {strides = array<i32>} : memref<32x128xf32, #tpu.memory_space<vmem>>, vector<32x128xf32>,
    return
  }
  func.func @transform_0(%arg0: i32, %arg1: i32) -> (i32, i32) {
    %c0_i32 = arith.constant 0 : i32
    %c0_i32_0 = arith.constant 0 : i32
    return %arg1, %c0_i32 : i32, i32
  }
  func.func @transform_1(%arg0: i32, %arg1: i32) -> (i32, i32) {
    %c0_i32 = arith.constant 0 : i32
    %c0_i32_0 = arith.constant 0 : i32
    return %c0_i32, %arg0 : i32, i32
  }
  func.func @transform_2(%arg0: i32, %arg1: i32) -> (i32, i32) {
    %c0_i32 = arith.constant 0 : i32
    %c0_i32_0 = arith.constant 0 : i32
    return %c0_i32, %arg0 : i32, i32
  }
  func.func @transform_3(%arg0: i32, %arg1: i32) -> (i32, i32) {
    %c0_i32 = arith.constant 0 : i32
    return %arg1, %arg0 : i32, i32
  }
}

module attributes {stable_mosaic.version = 11 : i64} {
  func.func @_linear_kernel(%arg0: i32, %arg1: i32, %arg2: memref<32x32xf32, #tpu.memory_space<vmem>>, %arg3: memref<32x256xf32, #tpu.memory_space<vmem>>, %arg4: memref<1x256xf32, #tpu.memory_space<vmem>>, %arg5: memref<32x256xf32, #tpu.memory_space<vmem>>) attributes {dimension_semantics = [#tpu.dimension_semantics<parallel>, #tpu.dimension_semantics<parallel>], iteration_bounds = array<i64: 1, 1>, scalar_prefetch = 0 : i64, scratch_operands = 0 : i64, tpu.core_type = #tpu.core_type<tc>, window_params = [{transform_indices = @transform_0, window_bounds = array<i64: 32, 32>}, {transform_indices = @transform_1, window_bounds = array<i64: 32, 256>}, {transform_indices = @transform_2, window_bounds = array<i64: 1, 256>}, {transform_indices = @transform_3, window_bounds = array<i64: 32, 256>}]} {
    %c0 = arith.constant 0 : index
    %c0_0 = arith.constant 0 : index
    %0 = vector.load %arg2[%c0, %c0_0] : memref<32x32xf32, #tpu.memory_space<vmem>>, vector<32x32xf32>
    %1 = arith.truncf %0 : vector<32x32xf32> to vector<32x32xbf16>
    %c0_1 = arith.constant 0 : index
    %c0_2 = arith.constant 0 : index
    %2 = vector.load %arg3[%c0_1, %c0_2] : memref<32x256xf32, #tpu.memory_space<vmem>>, vector<32x256xf32>
    %3 = arith.truncf %2 : vector<32x256xf32> to vector<32x256xbf16>
    %cst = arith.constant dense<0.000000e+00> : vector<32x256xf32>
    %4 = tpu.matmul %1, %3, %cst {dimension_numbers = #tpu.dot_dimension_numbers<[1], [0], [0], [1], [0, 0, 1, 1], [], []>} : vector<32x32xbf16>, vector<32x256xbf16>, vector<32x256xf32> -> vector<32x256xf32>
    %c0_3 = arith.constant 0 : index
    %c0_4 = arith.constant 0 : index
    %5 = vector.load %arg4[%c0_3, %c0_4] : memref<1x256xf32, #tpu.memory_space<vmem>>, vector<1x256xf32>
    %6 = vector.broadcast %5 : vector<1x256xf32> to vector<32x256xf32>
    %7 = arith.addf %4, %6 : vector<32x256xf32>
    %cst_5 = arith.constant 0.000000e+00 : f32
    %8 = vector.broadcast %cst_5 : f32 to vector<32x256xf32>
    %9 = arith.cmpf oge, %7, %8 : vector<32x256xf32>
    %cst_6 = arith.constant 1.000000e-01 : f32
    %10 = vector.broadcast %cst_6 : f32 to vector<32x256xf32>
    %11 = arith.mulf %10, %7 : vector<32x256xf32>
    %12 = arith.select %9, %7, %11 : vector<32x256xi1>, vector<32x256xf32>
    %c0_7 = arith.constant 0 : index
    %c0_8 = arith.constant 0 : index
    %13 = vector.load %arg5[%c0_7, %c0_8] : memref<32x256xf32, #tpu.memory_space<vmem>>, vector<32x256xf32>
    tpu.vector_store %arg5[%c0_7, %c0_8], %12 {strides = array<i32>} : memref<32x256xf32, #tpu.memory_space<vmem>>, vector<32x256xf32>,
    return
  }
  func.func @transform_0(%arg0: i32, %arg1: i32) -> (i32, i32) {
    %c0_i32 = arith.constant 0 : i32
    %c0_i32_0 = arith.constant 0 : i32
    return %arg1, %c0_i32 : i32, i32
  }
  func.func @transform_1(%arg0: i32, %arg1: i32) -> (i32, i32) {
    %c0_i32 = arith.constant 0 : i32
    %c0_i32_0 = arith.constant 0 : i32
    return %c0_i32, %arg0 : i32, i32
  }
  func.func @transform_2(%arg0: i32, %arg1: i32) -> (i32, i32) {
    %c0_i32 = arith.constant 0 : i32
    %c0_i32_0 = arith.constant 0 : i32
    return %c0_i32, %arg0 : i32, i32
  }
  func.func @transform_3(%arg0: i32, %arg1: i32) -> (i32, i32) {
    %c0_i32 = arith.constant 0 : i32
    return %arg1, %arg0 : i32, i32
  }
}

module attributes {stable_mosaic.version = 11 : i64} {
  func.func @_linear_kernel(%arg0: i32, %arg1: i32, %arg2: memref<32x256xf32, #tpu.memory_space<vmem>>, %arg3: memref<256x128xf32, #tpu.memory_space<vmem>>, %arg4: memref<1x128xf32, #tpu.memory_space<vmem>>, %arg5: memref<32x128xf32, #tpu.memory_space<vmem>>) attributes {dimension_semantics = [#tpu.dimension_semantics<parallel>, #tpu.dimension_semantics<parallel>], iteration_bounds = array<i64: 1, 1>, scalar_prefetch = 0 : i64, scratch_operands = 0 : i64, tpu.core_type = #tpu.core_type<tc>, window_params = [{transform_indices = @transform_0, window_bounds = array<i64: 32, 256>}, {transform_indices = @transform_1, window_bounds = array<i64: 256, 128>}, {transform_indices = @transform_2, window_bounds = array<i64: 1, 128>}, {transform_indices = @transform_3, window_bounds = array<i64: 32, 128>}]} {
    %c0 = arith.constant 0 : index
    %c0_0 = arith.constant 0 : index
    %0 = vector.load %arg2[%c0, %c0_0] : memref<32x256xf32, #tpu.memory_space<vmem>>, vector<32x256xf32>
    %1 = arith.truncf %0 : vector<32x256xf32> to vector<32x256xbf16>
    %c0_1 = arith.constant 0 : index
    %c0_2 = arith.constant 0 : index
    %2 = vector.load %arg3[%c0_1, %c0_2] : memref<256x128xf32, #tpu.memory_space<vmem>>, vector<256x128xf32>
    %3 = arith.truncf %2 : vector<256x128xf32> to vector<256x128xbf16>
    %cst = arith.constant dense<0.000000e+00> : vector<32x128xf32>
    %4 = tpu.matmul %1, %3, %cst {dimension_numbers = #tpu.dot_dimension_numbers<[1], [0], [0], [1], [0, 0, 1, 1], [], []>} : vector<32x256xbf16>, vector<256x128xbf16>, vector<32x128xf32> -> vector<32x128xf32>
    %c0_3 = arith.constant 0 : index
    %c0_4 = arith.constant 0 : index
    %5 = vector.load %arg4[%c0_3, %c0_4] : memref<1x128xf32, #tpu.memory_space<vmem>>, vector<1x128xf32>
    %6 = vector.broadcast %5 : vector<1x128xf32> to vector<32x128xf32>
    %7 = arith.addf %4, %6 : vector<32x128xf32>
    %c0_5 = arith.constant 0 : index
    %c0_6 = arith.constant 0 : index
    %8 = vector.load %arg5[%c0_5, %c0_6] : memref<32x128xf32, #tpu.memory_space<vmem>>, vector<32x128xf32>
    tpu.vector_store %arg5[%c0_5, %c0_6], %7 {strides = array<i32>} : memref<32x128xf32, #tpu.memory_space<vmem>>, vector<32x128xf32>,
    return
  }
  func.func @transform_0(%arg0: i32, %arg1: i32) -> (i32, i32) {
    %c0_i32 = arith.constant 0 : i32
    %c0_i32_0 = arith.constant 0 : i32
    return %arg1, %c0_i32 : i32, i32
  }
  func.func @transform_1(%arg0: i32, %arg1: i32) -> (i32, i32) {
    %c0_i32 = arith.constant 0 : i32
    %c0_i32_0 = arith.constant 0 : i32
    return %c0_i32, %arg0 : i32, i32
  }
  func.func @transform_2(%arg0: i32, %arg1: i32) -> (i32, i32) {
    %c0_i32 = arith.constant 0 : i32
    %c0_i32_0 = arith.constant 0 : i32
    return %c0_i32, %arg0 : i32, i32
  }
  func.func @transform_3(%arg0: i32, %arg1: i32) -> (i32, i32) {
    %c0_i32 = arith.constant 0 : i32
    return %arg1, %arg0 : i32, i32
  }
}

module attributes {stable_mosaic.version = 11 : i64} {
  func.func @_linear_kernel(%arg0: i32, %arg1: i32, %arg2: memref<32x32xf32, #tpu.memory_space<vmem>>, %arg3: memref<32x128xf32, #tpu.memory_space<vmem>>, %arg4: memref<1x128xf32, #tpu.memory_space<vmem>>, %arg5: memref<32x128xf32, #tpu.memory_space<vmem>>) attributes {dimension_semantics = [#tpu.dimension_semantics<parallel>, #tpu.dimension_semantics<parallel>], iteration_bounds = array<i64: 1, 1>, scalar_prefetch = 0 : i64, scratch_operands = 0 : i64, tpu.core_type = #tpu.core_type<tc>, window_params = [{transform_indices = @transform_0, window_bounds = array<i64: 32, 32>}, {transform_indices = @transform_1, window_bounds = array<i64: 32, 128>}, {transform_indices = @transform_2, window_bounds = array<i64: 1, 128>}, {transform_indices = @transform_3, window_bounds = array<i64: 32, 128>}]} {
    %c0 = arith.constant 0 : index
    %c0_0 = arith.constant 0 : index
    %0 = vector.load %arg2[%c0, %c0_0] : memref<32x32xf32, #tpu.memory_space<vmem>>, vector<32x32xf32>
    %1 = arith.truncf %0 : vector<32x32xf32> to vector<32x32xbf16>
    %c0_1 = arith.constant 0 : index
    %c0_2 = arith.constant 0 : index
    %2 = vector.load %arg3[%c0_1, %c0_2] : memref<32x128xf32, #tpu.memory_space<vmem>>, vector<32x128xf32>
    %3 = arith.truncf %2 : vector<32x128xf32> to vector<32x128xbf16>
    %cst = arith.constant dense<0.000000e+00> : vector<32x128xf32>
    %4 = tpu.matmul %1, %3, %cst {dimension_numbers = #tpu.dot_dimension_numbers<[1], [0], [0], [1], [0, 0, 1, 1], [], []>} : vector<32x32xbf16>, vector<32x128xbf16>, vector<32x128xf32> -> vector<32x128xf32>
    %c0_3 = arith.constant 0 : index
    %c0_4 = arith.constant 0 : index
    %5 = vector.load %arg4[%c0_3, %c0_4] : memref<1x128xf32, #tpu.memory_space<vmem>>, vector<1x128xf32>
    %6 = vector.broadcast %5 : vector<1x128xf32> to vector<32x128xf32>
    %7 = arith.addf %4, %6 : vector<32x128xf32>
    %c0_5 = arith.constant 0 : index
    %c0_6 = arith.constant 0 : index
    %8 = vector.load %arg5[%c0_5, %c0_6] : memref<32x128xf32, #tpu.memory_space<vmem>>, vector<32x128xf32>
    tpu.vector_store %arg5[%c0_5, %c0_6], %7 {strides = array<i32>} : memref<32x128xf32, #tpu.memory_space<vmem>>, vector<32x128xf32>,
    return
  }
  func.func @transform_0(%arg0: i32, %arg1: i32) -> (i32, i32) {
    %c0_i32 = arith.constant 0 : i32
    %c0_i32_0 = arith.constant 0 : i32
    return %arg1, %c0_i32 : i32, i32
  }
  func.func @transform_1(%arg0: i32, %arg1: i32) -> (i32, i32) {
    %c0_i32 = arith.constant 0 : i32
    %c0_i32_0 = arith.constant 0 : i32
    return %c0_i32, %arg0 : i32, i32
  }
  func.func @transform_2(%arg0: i32, %arg1: i32) -> (i32, i32) {
    %c0_i32 = arith.constant 0 : i32
    %c0_i32_0 = arith.constant 0 : i32
    return %c0_i32, %arg0 : i32, i32
  }
  func.func @transform_3(%arg0: i32, %arg1: i32) -> (i32, i32) {
    %c0_i32 = arith.constant 0 : i32
    return %arg1, %arg0 : i32, i32
  }
}

</mosaic_0001>

<bundles_post_ra>
// kernel: acoustic_generator_forward.30
= control target key start
LH: loop header
LB: loop body
LE: loop exit
PB: predicated region body
PF: predicated region fallthrough
CT: control target
= control target key end

     0   :  { %vm28_vm0 = vcmask 261120   ;;  %s101_s1 = inlined_call_operand.vmem [shape: f32[32,128], index: 1, kind: input, shape index: {}]   ;;  %s102_s0 = inlined_call_operand.vmem [shape: f32[16,32], index: 0, kind: input, shape index: {}]   ;;  %s103_s2 = inlined_call_operand.vmem [shape: f32[1,128], index: 2, kind: input, shape index: {}]   ;;  %s104_s3 = inlined_call_operand.vmem [shape: f32[16,128], index: 3, kind: output, shape index: {}]  }
   0x1   :  { %v20_v0 = vld [vmem:[%s101_s1 + $0x10] sm:$0xff]  ;;  %v21_v1 = vld [vmem:[%s101_s1 + $0x18] sm:$0xff]  ;;  %v18_v2 = vld [vmem:[%s101_s1] sm:$0xff] }
   0x2   :  { %v23_v3 = vpack.c.bf16 %v21_v1, %v20_v0  ;;  %v19_v4 = vld [vmem:[%s101_s1 + $0x8] sm:$0xff]  ;;  %v15_v6 = vld [vmem:[%s102_s0] sm:$0xff] }
   0x3   :  { %v22_v5 = vpack.c.bf16 %v19_v4, %v18_v2  ;;  %v16_v7 = vld [vmem:[%s102_s0 + $0x8] sm:$0xff]  ;;  %v53_v9 = vld [vmem:[%s103_s2] ss:$0 sm:$0xff] }
   0x4   :  { %38 = vmatpush.bf16.msra.mxu0 %v23_v3  ;;  %v17_v8 = vpack.c.bf16 %v16_v7, %v15_v6 }
   0x8   :  { %39 = vmatpush.bf16.msra.mxu0 %v22_v5 }
   0xb   :  { %52 = vmatmul.msk.bf16.vlgmr.msra.gmra.mxu0 %vm28_vm0, %v17_v8 }
  0x88   :  { %v41_v10 = vpop.f32.mrf.mxu0 }
  0x89   :  { %v42_v11 = vadd.f32 %v53_v9, %v41_v10 }
  0x8b   :  { %46 = vst [vmem:[%s104_s3] sm:$0xff] %v42_v11 }
  0x90   :  { %v43_v12 = vpop.f32.mrf.mxu0 }
  0x91   :  { %v44_v13 = vadd.f32 %v53_v9, %v43_v12 }
  0x93   :  { %47 = vst [vmem:[%s104_s3 + $0x8] sm:$0xff] %v44_v13 }

// kernel: acoustic_generator_forward.31
= control target key start
LH: loop header
LB: loop body
LE: loop exit
PB: predicated region body
PF: predicated region fallthrough
CT: control target
= control target key end

     0   :  { %vm28_vm0 = vcmask 1040384   ;;  %v57_v1 = vmov 0   ;;  %vm24_vm1 = vcmask 7168   ;;  %s96_s1 = inlined_call_operand.vmem [shape: f32[1,128], index: 1, kind: input, shape index: {}]   ;;  %s97_s0 = inlined_call_operand.vmem [shape: f32[16,1], index: 0, kind: input, shape index: {}]   ;;  %s98_s2 = inlined_call_operand.vmem [shape: f32[1,128], index: 2, kind: input, shape index: {}]   ;;  %s99_s3 = inlined_call_operand.vmem [shape: f32[16,128], index: 3, kind: output, shape index: {}]  }
   0x1   :  { %v18_v0 = vld [vmem:[%s96_s1] sm:$0x1]  ;;  %v30_v2 = vsel %vm28_vm0, 65535, %v57_v1  ;;  %v16_v5 = vld [vmem:[%s97_s0 + $0x8] sm:$0xff] }
   0x2   :  { %v19_v3 = vpack.c.bf16 %v18_v0, %v18_v0  ;;  %v15_v4 = vld [vmem:[%s97_s0] sm:$0xff] }
   0x3   :  { %v17_v7 = vpack.c.bf16 %v16_v5, %v15_v4  ;;  %v56_v8 = vld [vmem:[%s98_s2] ss:$0 sm:$0xff] }
   0x4   :  { %v32_v6 = vand.u32 %v30_v2, %v19_v3 }
   0x6   :  { %41 = vmatpush.bf16.msra.mxu0 %v32_v6 }
   0x9   :  { %54 = vmatmul.msk.bf16.vlgmr.msra.gmra.mxu0 %vm24_vm1, %v17_v7 }
  0x86   :  { %v43_v9 = vpop.f32.mrf.mxu0 }
  0x87   :  { %v44_v10 = vadd.f32 %v56_v8, %v43_v9 }
  0x89   :  { %48 = vst [vmem:[%s99_s3] sm:$0xff] %v44_v10 }
  0x8e   :  { %v45_v11 = vpop.f32.mrf.mxu0 }
  0x8f   :  { %v46_v12 = vadd.f32 %v56_v8, %v45_v11 }
  0x91   :  { %49 = vst [vmem:[%s99_s3 + $0x8] sm:$0xff] %v46_v12 }

// kernel: acoustic_generator_forward.33
= control target key start
LH: loop header
LB: loop body
LE: loop exit
PB: predicated region body
PF: predicated region fallthrough
CT: control target
= control target key end

     0   :  { %s604_s12 = smov 0   ;;  %s657_s0 = inlined_call_operand.vmem [shape: f32[2,4,8,8], index: 0, kind: input, shape index: {}]   ;;  %s658_s1 = inlined_call_operand.vmem [shape: f32[2,4,8,8], index: 1, kind: input, shape index: {}]   ;;  %s659_s2 = inlined_call_operand.vmem [shape: f32[2,4,8,8], index: 2, kind: input, shape index: {}]   ;;  %s660_s3 = inlined_call_operand.vmem [shape: f32[2,4,8,8], index: 3, kind: output, shape index: {}]  }
   0x1 LB: > { %s525_s13 = sadd.s32 4294967295, %s582_s12   ;;  %p529_p0 = scmp.ge.s32.totalorder %s582_s12, 1  ;;  %s582_s12 = sphi %s604_s12, %s13_s12  }
   0x2   : > { %p157_p1 = scmp.lt.s32.totalorder %s582_s12, 3 }
   0x4   : > { %p158_p2 = pnand %p529_p0, %p157_p1 }
   0x5   : > { %p191_p3 = scmp.lt.s32.totalorder (!%p158_p2), %s525_s13, 1 }
   0x6   : > { %161 = sbr.rel (%p158_p2) target bundleno = 437 (0x1b5), region = 32 }
   0xb   : > { %s662_s13 = smov (!%p191_p3, %s525_s13), 1  ;;  %vm236_vm0 = vcmask 64512   ;;  %vm360_vm1 = vcmask 1043456  }
   0xc   : > { %s612_s14 = sshll.u32 %s662_s13, 5 }
   0xd   : > { %s200_s17 = scalar_lea.vmem %s658_s1, %s612_s14  ;;  %s195_s20 = scalar_lea.vmem %s657_s0, %s612_s14 }
   0xe   : > { %v220_v0 = vld [vmem:[%s200_s17] sm:$0xff]  ;;  %v222_v1 = vld [vmem:[%s200_s17 + $0x10] sm:$0xff]  ;;  %v223_v2 = vld [vmem:[%s200_s17 + $0x18] sm:$0xff]  ;;  %s205_s23 = scalar_lea.vmem %s659_s2, %s612_s14  ;;  %s210_s26 = scalar_lea.vmem %s660_s3, %s612_s14 }
   0xf   : > { %v224_v3 = vpack.c.bf16 %v220_v0, %v220_v0  ;;  %v226_v4 = vpack.c.bf16 %v222_v1, %v222_v1  ;;  %v227_v5 = vpack.c.bf16 %v223_v2, %v223_v2  ;;  %v221_v6 = vld [vmem:[%s200_s17 + $0x8] sm:$0xff]  ;;  %v212_v11 = vld [vmem:[%s195_s20] sm:$0xff]  ;;  %v214_v12 = vld [vmem:[%s195_s20 + $0x10] sm:$0xff] }
  0x10   : > { %v225_v10 = vpack.c.bf16 %v221_v6, %v221_v6  ;;  %v215_v13 = vld [vmem:[%s195_s20 + $0x18] sm:$0xff]  ;;  %v213_v15 = vld [vmem:[%s195_s20 + $0x8] sm:$0xff]  ;;  %v216_v16 = vpack.c.bf16 %v212_v11, %v212_v11  ;;  %v218_v17 = vpack.c.bf16 %v214_v12, %v214_v12  ;;  %v228_v36 = vld [vmem:[%s205_s23] sm:$0xff] }
  0x11   : > { %v241_v7 = vsel %vm236_vm0, %v224_v3, 0  ;;  %v279_v8 = vsel %vm236_vm0, %v226_v4, 0  ;;  %v298_v9 = vsel %vm236_vm0, %v227_v5, 0  ;;  %v219_v18 = vpack.c.bf16 %v215_v13, %v215_v13  ;;  %v230_v39 = vld [vmem:[%s205_s23 + $0x10] sm:$0xff]  ;;  %v231_v40 = vld [vmem:[%s205_s23 + $0x18] sm:$0xff]  ;;  %v229_v45 = vld [vmem:[%s205_s23 + $0x8] sm:$0xff] }
  0x12   : > { %250 = vmatpush.bf16.xpose.msra.mxu0 %v241_v7  ;;  %288 = vmatpush.bf16.xpose.msra.mxu2 %v279_v8  ;;  %v260_v14 = vsel %vm236_vm0, %v225_v10, 0  ;;  %v217_v19 = vpack.c.bf16 %v213_v15, %v213_v15  ;;  %v232_v37 = vpack.c.bf16 %v228_v36, %v228_v36  ;;  %v234_v41 = vpack.c.bf16 %v230_v39, %v230_v39 }
  0x13   : > { %307 = vmatpush.bf16.xpose.msra.mxu3 %v298_v9  ;;  %269 = vmatpush.bf16.xpose.msra.mxu1 %v260_v14  ;;  %v235_v42 = vpack.c.bf16 %v231_v40, %v231_v40  ;;  %v233_v46 = vpack.c.bf16 %v229_v45, %v229_v45 }
  0x14   : > { %v362_v38 = vsel %vm360_vm1, %v232_v37, 0  ;;  %v400_v43 = vsel %vm360_vm1, %v234_v41, 0 }
  0x15   : > { %v419_v44 = vsel %vm360_vm1, %v235_v42, 0  ;;  %v381_v47 = vsel %vm360_vm1, %v233_v46, 0 }
  0x19   : > { %538 = vmatmul.msk.bf16.vlgmr.msra.gmra.mxu0 %vm236_vm0, %v216_v16  ;;  %540 = vmatmul.msk.bf16.vlgmr.msra.gmra.mxu2 %vm236_vm0, %v218_v17 }
  0x1a   : > { %541 = vmatmul.msk.bf16.vlgmr.msra.gmra.mxu3 %vm236_vm0, %v219_v18  ;;  %539 = vmatmul.msk.bf16.vlgmr.msra.gmra.mxu1 %vm236_vm0, %v217_v19 }
  0x1b   : > { %371 = vmatpush.bf16.msrb.mxu0 %v362_v38  ;;  %409 = vmatpush.bf16.msrb.mxu2 %v400_v43 }
  0x1c   : > { %428 = vmatpush.bf16.msrb.mxu3 %v419_v44  ;;  %390 = vmatpush.bf16.msrb.mxu1 %v381_v47 }
  0x96   : > { %v252_v20 = vpop.f32.mrf.mxu0 }
  0x97   : > { %v313_v21 = vmul.f32 0.35355338, %v252_v20  ;;  %v271_v22 = vpop.f32.mrf.mxu1 }
  0x98   : > { %v314_v24 = vmul.f32 0.35355338, %v271_v22 }
  0x99   : > { %v317_v23 = vsel %vm236_vm0, %v313_v21, -inf }
  0x9a   : > { %318 = vmax.xlane.f32.xlu1 %v317_v23  ;;  %v320_v30 = vsel %vm236_vm0, %v314_v24, -inf }
  0x9c   : > { %v290_v25 = vpop.f32.mrf.mxu2 }
  0x9d   : > { %v315_v26 = vmul.f32 0.35355338, %v290_v25  ;;  %v309_v27 = vpop.f32.mrf.mxu3 }
  0x9e   : > { %v254_v28 = vpop.f32.mrf.mxu0  ;;  %v316_v32 = vmul.f32 0.35355338, %v309_v27 }
  0x9f   : > { %v323_v29 = vsel %vm236_vm0, %v315_v26, -inf  ;;  %v273_v31 = vpop.f32.mrf.mxu1 }
  0xa0   : > { %324 = vmax.xlane.f32.xlu0 %v323_v29  ;;  %v326_v35 = vsel %vm236_vm0, %v316_v32, -inf }
  0xa2   : > { %321 = vmax.xlane.f32.xlu1 %v320_v30 }
  0xa4   : > { %v292_v33 = vpop.f32.mrf.mxu2 }
  0xa5   : > { %v311_v34 = vpop.f32.mrf.mxu3 }
  0xa8   : > { %327 = vmax.xlane.f32.xlu0 %v326_v35 }
 0x10d   : > { %v319_v48 = vpop.xlane.xlu1 %318 }
 0x10e   : > { %v329_v49 = vsub.f32 %v313_v21, %v319_v48 }
 0x110   : > { %v333_v50 = vmul.f32 1.442695, %v329_v49 }
 0x112   : > { %560 = vpow2.f32 %v333_v50 }
 0x113   : > { %v325_v51 = vpop.xlane.xlu0 %324 }
 0x114   : > { %v331_v52 = vsub.f32 %v315_v26, %v325_v51 }
 0x115   : > { %v322_v53 = vpop.xlane.xlu1 %321 }
 0x116   : > { %v337_v54 = vmul.f32 1.442695, %v331_v52  ;;  %v330_v55 = vsub.f32 %v314_v24, %v322_v53 }
 0x118   : > { %v561_v56 = vpop.eup %560  ;;  %562 = vpow2.f32 %v337_v54  ;;  %v335_v57 = vmul.f32 1.442695, %v330_v55 }
 0x119   : > { %v341_v58 = vsel %vm236_vm0, %v561_v56, 0.0  ;;  %v353_v59 = vpack.c.bf16 %v561_v56, %v561_v56 }
 0x11a   : > { %564 = vpow2.f32 %v335_v57  ;;  %342 = vadd.xlane.f32.xlu2 %v341_v58 }
 0x11b   : > { %v328_v60 = vpop.xlane.xlu0 %327  ;;  %542 = vmatmul.msk.bf16.vlgmr.msrb.gmra.mxu0 %vm236_vm0, %v353_v59 }
 0x11c   : > { %v332_v61 = vsub.f32 %v316_v32, %v328_v60 }
 0x11e   : > { %v563_v62 = vpop.eup %562  ;;  %v339_v63 = vmul.f32 1.442695, %v332_v61 }
 0x11f   : > { %v347_v0 = vsel %vm236_vm0, %v563_v62, 0.0  ;;  %v355_v1 = vpack.c.bf16 %v563_v62, %v563_v62 }
 0x120   : > { %v565_v2 = vpop.eup %564  ;;  %566 = vpow2.f32 %v339_v63  ;;  %348 = vadd.xlane.f32.xlu0 %v347_v0 }
 0x121   : > { %544 = vmatmul.msk.bf16.vlgmr.msrb.gmra.mxu2 %vm236_vm0, %v355_v1  ;;  %v344_v3 = vsel %vm236_vm0, %v565_v2, 0.0  ;;  %v354_v4 = vpack.c.bf16 %v565_v2, %v565_v2 }
 0x122   : > { %345 = vadd.xlane.f32.xlu2 %v344_v3 }
 0x123   : > { %543 = vmatmul.msk.bf16.vlgmr.msrb.gmra.mxu1 %vm236_vm0, %v354_v4 }
 0x126   : > { %v567_v5 = vpop.eup %566 }
 0x127   : > { %v350_v6 = vsel %vm236_vm0, %v567_v5, 0.0  ;;  %v356_v7 = vpack.c.bf16 %v567_v5, %v567_v5 }
 0x128   : > { %351 = vadd.xlane.f32.xlu1 %v350_v6 }
 0x129   : > { %545 = vmatmul.msk.bf16.vlgmr.msrb.gmra.mxu3 %vm236_vm0, %v356_v7 }
 0x18d   : > { %v343_v8 = vpop.xlane.xlu2 %342 }
 0x18e   : > { %568 = vrcp.f32 %v343_v8 }
 0x193   : > { %v349_v13 = vpop.xlane.xlu0 %348 }
 0x194   : > { %v569_v10 = vpop.eup %568 }
 0x195   : > { %v346_v9 = vpop.xlane.xlu2 %345 }
 0x196   : > { %570 = vrcp.f32 %v346_v9 }
 0x197   : > { %572 = vrcp.f32 %v349_v13 }
 0x198   : > { %v373_v11 = vpop.f32.mrf.mxu0 }
 0x199   : > { %v438_v12 = vmul.f32 %v569_v10, %v373_v11 }
 0x19b   : > { %442 = vst.msk [vmem:[%s210_s26] sm:$0xff] %vm236_vm0, %v438_v12  ;;  %v352_v18 = vpop.xlane.xlu1 %351 }
 0x19c   : > { %v571_v14 = vpop.eup %570  ;;  %574 = vrcp.f32 %v352_v18 }
 0x19d   : > { %v573_v19 = vpop.eup %572 }
 0x1a0   : > { %v375_v15 = vpop.f32.mrf.mxu0  ;;  %v392_v16 = vpop.f32.mrf.mxu1 }
 0x1a1   : > { %v439_v17 = vmul.f32 %v571_v14, %v392_v16 }
 0x1a2   : > { %v575_v23 = vpop.eup %574 }
 0x1a3   : > { %443 = vst.msk [vmem:[%s210_s26 + $0x8] sm:$0xff] %vm236_vm0, %v439_v17 }
 0x1a4   : > { %v411_v20 = vpop.f32.mrf.mxu2 }
 0x1a5   : > { %v440_v21 = vmul.f32 %v573_v19, %v411_v20 }
 0x1a7   : > { %444 = vst.msk [vmem:[%s210_s26 + $0x10] sm:$0xff] %vm236_vm0, %v440_v21 }
 0x1a8   : > { %v394_v22 = vpop.f32.mrf.mxu1 }
 0x1ac   : > { %v413_v24 = vpop.f32.mrf.mxu2  ;;  %v430_v25 = vpop.f32.mrf.mxu3 }
 0x1ad   : > { %v441_v26 = vmul.f32 %v575_v23, %v430_v25 }
 0x1af   : > { %445 = vst.msk [vmem:[%s210_s26 + $0x18] sm:$0xff] %vm236_vm0, %v441_v26 }
 0x1b4   : > { %v432_v27 = vpop.f32.mrf.mxu3 }
 0x1b5 PF: > { %s13_s12 = sadd.s32 1, %s582_s12  }
 0x1b6   : > { %p10_p4 = scmp.ge.s32.totalorder %s13_s12, 4  }
 0x1b8   :  { %12 = sbr.rel (!%p10_p4) target bundleno = 1 (0x1), region = 68 }

// kernel: acoustic_generator_forward.35
= control target key start
LH: loop header
LB: loop body
LE: loop exit
PB: predicated region body
PF: predicated region fallthrough
CT: control target
= control target key end

     0   :  { %vm23_vm0 = vcmask 261120   ;;  %v102_v8 = vmov 32.0   ;;  %s158_s0 = inlined_call_operand.vmem [shape: f32[16,32], index: 0, kind: input, shape index: {}]   ;;  %s159_s1 = inlined_call_operand.vmem [shape: f32[16,32], index: 1, kind: input, shape index: {}]   ;;  %s160_s2 = inlined_call_operand.vmem [shape: f32[1,32], index: 2, kind: input, shape index: {}]   ;;  %s161_s3 = inlined_call_operand.vmem [shape: f32[1,32], index: 3, kind: input, shape index: {}]   ;;  %s162_s4 = inlined_call_operand.vmem [shape: f32[16,32], index: 4, kind: output, shape index: {}]  }
   0x1   :  { %v17_v0 = vld [vmem:[%s158_s0] sm:$0xff]  ;;  %v18_v3 = vld [vmem:[%s158_s0 + $0x8] sm:$0xff]  ;;  %96 = vrcp.f32 %v102_v8 }
   0x2   :  { %v19_v1 = vld [vmem:[%s159_s1] sm:$0xff]  ;;  %v20_v4 = vld [vmem:[%s159_s1 + $0x8] sm:$0xff] }
   0x3   :  { %v21_v2 = vadd.f32 %v19_v1, %v17_v0  ;;  %v22_v6 = vadd.f32 %v20_v4, %v18_v3  ;;  %v94_v39 = vld [vmem:[%s160_s2] ss:$0 sm:$0xff] }
   0x4   :  { %v95_v42 = vld [vmem:[%s161_s3] ss:$0 sm:$0xff] }
   0x5   :  { %v24_v5 = vsel %vm23_vm0, %v21_v2, 0.0  ;;  %v27_v7 = vsel %vm23_vm0, %v22_v6, 0.0 }
   0x6   :  { %25 = vadd.xlane.f32.xlu0 %v24_v5 }
   0x7   :  { %v97_v9 = vpop.eup %96 }
   0x8   :  { %v31_v10 = vmul.f32 32.0, %v97_v9  ;;  %vm35_vm1 = vweird.f32 %v97_v9 }
   0xa   :  { %v32_v11 = vsub.f32 1.0, %v31_v10 }
   0xc   :  { %v33_v12 = vmul.f32 %v97_v9, %v32_v11 }
   0xe   :  { %28 = vadd.xlane.f32.xlu0 %v27_v7  ;;  %v34_v13 = vadd.f32 %v97_v9, %v33_v12 }
  0x10   :  { %v36_v14 = vsel %vm35_vm1, %v97_v9, %v34_v13 }
  0x79   :  { %v26_v15 = vpop.xlane.xlu0 %25 }
  0x7a   :  { %v37_v16 = vmul.f32 %v36_v14, %v26_v15 }
  0x7c   :  { %v39_v17 = vsub.f32 %v21_v2, %v37_v16 }
  0x7e   :  { %v41_v18 = vmul.f32 %v39_v17, %v39_v17 }
  0x80   :  { %v43_v19 = vsel %vm23_vm0, %v41_v18, 0.0 }
  0x81   :  { %44 = vadd.xlane.f32.xlu1 %v43_v19  ;;  %v29_v20 = vpop.xlane.xlu0 %28 }
  0x82   :  { %v38_v21 = vmul.f32 %v36_v14, %v29_v20 }
  0x84   :  { %v40_v22 = vsub.f32 %v22_v6, %v38_v21 }
  0x86   :  { %v42_v23 = vmul.f32 %v40_v22, %v40_v22 }
  0x88   :  { %v46_v24 = vsel %vm23_vm0, %v42_v23, 0.0 }
  0x89   :  { %47 = vadd.xlane.f32.xlu1 %v46_v24 }
  0xf4   :  { %v45_v25 = vpop.xlane.xlu1 %44 }
  0xf5   :  { %v49_v26 = vmul.f32 %v45_v25, %v36_v14 }
  0xf7   :  { %v51_v27 = vadd.f32 1e-05, %v49_v26 }
  0xf9   :  { %98 = vrsqrt.f32 %v51_v27  ;;  %vm59_vm3 = vweird.f32 %v51_v27 }
  0xfc   :  { %v48_v28 = vpop.xlane.xlu1 %47 }
  0xfd   :  { %v50_v29 = vmul.f32 %v48_v28, %v36_v14 }
  0xff   :  { %v99_v30 = vpop.eup %98  ;;  %v52_v31 = vadd.f32 1e-05, %v50_v29 }
 0x100   :  { %v54_v32 = vmul.f32 %v99_v30, %v51_v27  ;;  %vm60_vm2 = vweird.f32 %v99_v30 }
 0x101   :  { %100 = vrsqrt.f32 %v52_v31  ;;  %vm61_vm4 = vmor %vm59_vm3, %vm60_vm2  ;;  %vm69_vm6 = vweird.f32 %v52_v31 }
 0x102   :  { %v55_v33 = vmul.f32 %v99_v30, %v54_v32 }
 0x104   :  { %v56_v34 = vmul.f32 0.5, %v55_v33 }
 0x106   :  { %v57_v35 = vsub.f32 1.5, %v56_v34 }
 0x107   :  { %v101_v36 = vpop.eup %100 }
 0x108   :  { %v58_v37 = vmul.f32 %v99_v30, %v57_v35  ;;  %v64_v38 = vmul.f32 %v101_v36, %v52_v31  ;;  %vm70_vm5 = vweird.f32 %v101_v36 }
 0x109   :  { %vm71_vm7 = vmor %vm69_vm6, %vm70_vm5 }
 0x10a   :  { %v62_v40 = vsel %vm61_vm4, %v99_v30, %v58_v37  ;;  %v65_v41 = vmul.f32 %v101_v36, %v64_v38 }
 0x10b   :  { %v73_v43 = vmul.f32 %v62_v40, %v39_v17 }
 0x10c   :  { %v66_v44 = vmul.f32 0.5, %v65_v41 }
 0x10d   :  { %v79_v45 = vmul.f32 %v94_v39, %v73_v43 }
 0x10e   :  { %v67_v46 = vsub.f32 1.5, %v66_v44 }
 0x10f   :  { %v85_v47 = vadd.f32 %v95_v42, %v79_v45 }
 0x110   :  { %v68_v48 = vmul.f32 %v101_v36, %v67_v46 }
 0x111   :  { %87 = vst.msk [vmem:[%s162_s4] sm:$0xff] %vm23_vm0, %v85_v47 }
 0x112   :  { %v72_v49 = vsel %vm71_vm7, %v101_v36, %v68_v48 }
 0x113   :  { %v74_v50 = vmul.f32 %v72_v49, %v40_v22 }
 0x115   :  { %v80_v51 = vmul.f32 %v94_v39, %v74_v50 }
 0x117   :  { %v86_v52 = vadd.f32 %v95_v42, %v80_v51 }
 0x119   :  { %88 = vst.msk [vmem:[%s162_s4 + $0x8] sm:$0xff] %vm23_vm0, %v86_v52 }

// kernel: acoustic_generator_forward.36
= control target key start
LH: loop header
LB: loop body
LE: loop exit
PB: predicated region body
PF: predicated region fallthrough
CT: control target
= control target key end

     0   :  { %vm28_vm0 = vcmask 261120   ;;  %s103_s1 = inlined_call_operand.vmem [shape: f32[32,128], index: 1, kind: input, shape index: {}]   ;;  %s104_s0 = inlined_call_operand.vmem [shape: f32[16,32], index: 0, kind: input, shape index: {}]   ;;  %s105_s2 = inlined_call_operand.vmem [shape: f32[1,128], index: 2, kind: input, shape index: {}]   ;;  %s106_s3 = inlined_call_operand.vmem [shape: f32[16,128], index: 3, kind: output, shape index: {}]  }
   0x1   :  { %v20_v0 = vld [vmem:[%s103_s1 + $0x10] sm:$0xff]  ;;  %v21_v1 = vld [vmem:[%s103_s1 + $0x18] sm:$0xff]  ;;  %v18_v2 = vld [vmem:[%s103_s1] sm:$0xff] }
   0x2   :  { %v23_v3 = vpack.c.bf16 %v21_v1, %v20_v0  ;;  %v19_v4 = vld [vmem:[%s103_s1 + $0x8] sm:$0xff]  ;;  %v15_v6 = vld [vmem:[%s104_s0] sm:$0xff] }
   0x3   :  { %v22_v5 = vpack.c.bf16 %v19_v4, %v18_v2  ;;  %v16_v7 = vld [vmem:[%s104_s0 + $0x8] sm:$0xff]  ;;  %v55_v9 = vld [vmem:[%s105_s2] ss:$0 sm:$0xff] }
   0x4   :  { %38 = vmatpush.bf16.msra.mxu0 %v23_v3  ;;  %v17_v8 = vpack.c.bf16 %v16_v7, %v15_v6 }
   0x8   :  { %39 = vmatpush.bf16.msra.mxu0 %v22_v5 }
   0xb   :  { %54 = vmatmul.msk.bf16.vlgmr.msra.gmra.mxu0 %vm28_vm0, %v17_v8 }
  0x88   :  { %v41_v10 = vpop.f32.mrf.mxu0 }
  0x89   :  { %v42_v11 = vadd.f32 %v55_v9, %v41_v10 }
  0x8b   :  { %v46_v12 = vmax.f32 %v42_v11, 0.0 }
  0x8d   :  { %48 = vst [vmem:[%s106_s3] sm:$0xff] %v46_v12 }
  0x90   :  { %v43_v13 = vpop.f32.mrf.mxu0 }
  0x91   :  { %v44_v14 = vadd.f32 %v55_v9, %v43_v13 }
  0x93   :  { %v47_v15 = vmax.f32 %v44_v14, 0.0 }
  0x95   :  { %49 = vst [vmem:[%s106_s3 + $0x8] sm:$0xff] %v47_v15 }

// kernel: acoustic_generator_forward.37
= control target key start
LH: loop header
LB: loop body
LE: loop exit
PB: predicated region body
PF: predicated region fallthrough
CT: control target
= control target key end

     0   :  { %vm34_vm0 = vcmask 523264   ;;  %s119_s1 = inlined_call_operand.vmem [shape: f32[64,128], index: 1, kind: input, shape index: {}]   ;;  %s120_s2 = inlined_call_operand.vmem [shape: f32[1,128], index: 2, kind: input, shape index: {}]   ;;  %s121_s0 = inlined_call_operand.vmem [shape: f32[16,64], index: 0, kind: input, shape index: {}]   ;;  %s122_s3 = inlined_call_operand.vmem [shape: f32[16,128], index: 3, kind: output, shape index: {}]  }
   0x1   :  { %v24_v0 = vld [vmem:[%s119_s1 + $0x30] sm:$0xff]  ;;  %v25_v1 = vld [vmem:[%s119_s1 + $0x38] sm:$0xff]  ;;  %v22_v2 = vld [vmem:[%s119_s1 + $0x20] sm:$0xff] }
   0x2   :  { %v29_v3 = vpack.c.bf16 %v25_v1, %v24_v0  ;;  %v23_v4 = vld [vmem:[%s119_s1 + $0x28] sm:$0xff]  ;;  %v20_v6 = vld [vmem:[%s119_s1 + $0x10] sm:$0xff]  ;;  %v21_v7 = vld [vmem:[%s119_s1 + $0x18] sm:$0xff] }
   0x3   :  { %v28_v5 = vpack.c.bf16 %v23_v4, %v22_v2  ;;  %v27_v8 = vpack.c.bf16 %v21_v7, %v20_v6  ;;  %v18_v9 = vld [vmem:[%s119_s1] sm:$0xff]  ;;  %v19_v10 = vld [vmem:[%s119_s1 + $0x8] sm:$0xff] }
   0x4   :  { %42 = vmatpush.bf16.msra.mxu0 %v29_v3  ;;  %v26_v11 = vpack.c.bf16 %v19_v10, %v18_v9  ;;  %v15_v12 = vld [vmem:[%s121_s0] sm:$0xff]  ;;  %v16_v13 = vld [vmem:[%s121_s0 + $0x8] sm:$0xff] }
   0x5   :  { %v17_v14 = vpack.c.bf16 %v16_v13, %v15_v12  ;;  %v59_v15 = vld [vmem:[%s120_s2] ss:$0 sm:$0xff] }
   0x8   :  { %43 = vmatpush.bf16.msra.mxu0 %v28_v5 }
   0xc   :  { %44 = vmatpush.bf16.msra.mxu0 %v27_v8 }
  0x10   :  { %45 = vmatpush.bf16.msra.mxu0 %v26_v11 }
  0x13   :  { %58 = vmatmul.msk.bf16.vlgmr.msra.gmra.mxu0 %vm34_vm0, %v17_v14 }
  0x90   :  { %v47_v16 = vpop.f32.mrf.mxu0 }
  0x91   :  { %v48_v17 = vadd.f32 %v59_v15, %v47_v16 }
  0x93   :  { %52 = vst [vmem:[%s122_s3] sm:$0xff] %v48_v17 }
  0x98   :  { %v49_v18 = vpop.f32.mrf.mxu0 }
  0x99   :  { %v50_v19 = vadd.f32 %v59_v15, %v49_v18 }
  0x9b   :  { %53 = vst [vmem:[%s122_s3 + $0x8] sm:$0xff] %v50_v19 }

// kernel: acoustic_generator_forward.46
= control target key start
LH: loop header
LB: loop body
LE: loop exit
PB: predicated region body
PF: predicated region fallthrough
CT: control target
= control target key end

     0   :  { %vm31_vm0 = vcmask 261120   ;;  %s129_s1 = inlined_call_operand.vmem [shape: f32[32,128], index: 1, kind: input, shape index: {}]   ;;  %s130_s0 = inlined_call_operand.vmem [shape: f32[32,32], index: 0, kind: input, shape index: {}]   ;;  %s131_s2 = inlined_call_operand.vmem [shape: f32[1,128], index: 2, kind: input, shape index: {}]   ;;  %s132_s3 = inlined_call_operand.vmem [shape: f32[32,128], index: 3, kind: output, shape index: {}]  }
   0x1   :  { %v23_v0 = vld [vmem:[%s129_s1 + $0x10] sm:$0xff]  ;;  %v24_v1 = vld [vmem:[%s129_s1 + $0x18] sm:$0xff]  ;;  %v21_v2 = vld [vmem:[%s129_s1] sm:$0xff] }
   0x2   :  { %v26_v3 = vpack.c.bf16 %v24_v1, %v23_v0  ;;  %v22_v4 = vld [vmem:[%s129_s1 + $0x8] sm:$0xff]  ;;  %v15_v5 = vld [vmem:[%s130_s0] sm:$0xff]  ;;  %v17_v8 = vld [vmem:[%s130_s0 + $0x10] sm:$0xff] }
   0x3   :  { %v25_v6 = vpack.c.bf16 %v22_v4, %v21_v2  ;;  %v16_v7 = vld [vmem:[%s130_s0 + $0x8] sm:$0xff]  ;;  %v18_v9 = vld [vmem:[%s130_s0 + $0x18] sm:$0xff]  ;;  %v69_v12 = vld [vmem:[%s131_s2] ss:$0 sm:$0xff] }
   0x4   :  { %44 = vmatpush.bf16.msra.mxu0 %v26_v3  ;;  %67 = vmatpush.bf16.msra.mxu1 %v26_v3  ;;  %v19_v10 = vpack.c.bf16 %v16_v7, %v15_v5  ;;  %v20_v11 = vpack.c.bf16 %v18_v9, %v17_v8 }
   0x8   :  { %45 = vmatpush.bf16.msra.mxu0 %v25_v6  ;;  %68 = vmatpush.bf16.msra.mxu1 %v25_v6 }
   0xb   :  { %65 = vmatmul.msk.bf16.vlgmr.msra.gmra.mxu0 %vm31_vm0, %v19_v10  ;;  %66 = vmatmul.msk.bf16.vlgmr.msra.gmra.mxu1 %vm31_vm0, %v20_v11 }
  0x88   :  { %v47_v13 = vpop.f32.mrf.mxu0  ;;  %v52_v14 = vpop.f32.mrf.mxu1 }
  0x89   :  { %v48_v15 = vadd.f32 %v69_v12, %v47_v13  ;;  %v53_v16 = vadd.f32 %v69_v12, %v52_v14 }
  0x8b   :  { %57 = vst [vmem:[%s132_s3] sm:$0xff] %v48_v15 }
  0x8c   :  { %59 = vst [vmem:[%s132_s3 + $0x10] sm:$0xff] %v53_v16 }
  0x90   :  { %v49_v17 = vpop.f32.mrf.mxu0  ;;  %v54_v18 = vpop.f32.mrf.mxu1 }
  0x91   :  { %v50_v19 = vadd.f32 %v69_v12, %v49_v17  ;;  %v55_v20 = vadd.f32 %v69_v12, %v54_v18 }
  0x93   :  { %58 = vst [vmem:[%s132_s3 + $0x8] sm:$0xff] %v50_v19 }
  0x94   :  { %60 = vst [vmem:[%s132_s3 + $0x18] sm:$0xff] %v55_v20 }

// kernel: acoustic_generator_forward.48
= control target key start
LH: loop header
LB: loop body
LE: loop exit
PB: predicated region body
PF: predicated region fallthrough
CT: control target
= control target key end

     0   :  { %s732_s12 = smov 0   ;;  %s825_s0 = inlined_call_operand.vmem [shape: f32[2,4,16,8], index: 0, kind: input, shape index: {}]   ;;  %s826_s1 = inlined_call_operand.vmem [shape: f32[2,4,8,8], index: 1, kind: input, shape index: {}]   ;;  %s827_s2 = inlined_call_operand.vmem [shape: f32[2,4,8,8], index: 2, kind: input, shape index: {}]   ;;  %s828_s3 = inlined_call_operand.vmem [shape: f32[2,4,16,8], index: 3, kind: output, shape index: {}]  }
   0x1 LB: > { %s637_s13 = sadd.s32 4294967295, %s710_s12   ;;  %p641_p0 = scmp.ge.s32.totalorder %s710_s12, 1  ;;  %s710_s12 = sphi %s732_s12, %s13_s12  }
   0x2   : > { %p157_p1 = scmp.lt.s32.totalorder %s710_s12, 3 }
   0x4   : > { %p158_p2 = pnand %p641_p0, %p157_p1 }
   0x5   : > { %p191_p3 = scmp.lt.s32.totalorder (!%p158_p2), %s637_s13, 1 }
   0x6   : > { %161 = sbr.rel (%p158_p2) target bundleno = 447 (0x1bf), region = 32 }
   0xb   : > { %s830_s13 = smov (!%p191_p3, %s637_s13), 1  ;;  %vm249_vm0 = vcmask 64512   ;;  %vm441_vm1 = vcmask 1043456  }
   0xc   : > { %s660_s14 = sshll.u32 %s830_s13, 6  ;;  %s661_s15 = sshll.u32 %s830_s13, 5 }
   0xd   : > { %s195_s18 = scalar_lea.vmem %s825_s0, %s660_s14  ;;  %s200_s21 = scalar_lea.vmem %s826_s1, %s661_s15 }
   0xe   : > { %v228_v0 = vld [vmem:[%s200_s21] sm:$0xff]  ;;  %v230_v1 = vld [vmem:[%s200_s21 + $0x10] sm:$0xff]  ;;  %v231_v2 = vld [vmem:[%s200_s21 + $0x18] sm:$0xff]  ;;  %s205_s24 = scalar_lea.vmem %s827_s2, %s661_s15  ;;  %s804_s27 = scalar_lea.vmem %s828_s3, %s660_s14 }
   0xf   : > { %v232_v3 = vpack.c.bf16 %v228_v0, %v228_v0  ;;  %v234_v4 = vpack.c.bf16 %v230_v1, %v230_v1  ;;  %v235_v5 = vpack.c.bf16 %v231_v2, %v231_v2  ;;  %v229_v6 = vld [vmem:[%s200_s21 + $0x8] sm:$0xff]  ;;  %v212_v7 = vld [vmem:[%s195_s18] sm:$0xff]  ;;  %v218_v14 = vld [vmem:[%s195_s18 + $0x30] sm:$0xff] }
  0x10   : > { %v213_v8 = vld [vmem:[%s195_s18 + $0x8] sm:$0xff]  ;;  %v233_v9 = vpack.c.bf16 %v229_v6, %v229_v6  ;;  %v220_v10 = vpack.c.bf16 %v212_v7, %v212_v7  ;;  %v216_v12 = vld [vmem:[%s195_s18 + $0x20] sm:$0xff]  ;;  %v219_v19 = vld [vmem:[%s195_s18 + $0x38] sm:$0xff]  ;;  %v226_v27 = vpack.c.bf16 %v218_v14, %v218_v14 }
  0x11   : > { %v221_v11 = vpack.c.bf16 %v213_v8, %v213_v8  ;;  %v217_v13 = vld [vmem:[%s195_s18 + $0x28] sm:$0xff]  ;;  %v254_v15 = vsel %vm249_vm0, %v232_v3, 0  ;;  %v304_v16 = vsel %vm249_vm0, %v234_v4, 0  ;;  %v329_v17 = vsel %vm249_vm0, %v235_v5, 0  ;;  %v214_v20 = vld [vmem:[%s195_s18 + $0x10] sm:$0xff]  ;;  %v215_v21 = vld [vmem:[%s195_s18 + $0x18] sm:$0xff] }
  0x12   : > { %v224_v18 = vpack.c.bf16 %v216_v12, %v216_v12  ;;  %263 = vmatpush.bf16.xpose.msra.mxu0 %v254_v15  ;;  %313 = vmatpush.bf16.xpose.msra.mxu2 %v304_v16  ;;  %v279_v22 = vsel %vm249_vm0, %v233_v9, 0  ;;  %v246_v23 = vunpack.c.l.b16 %v220_v10  ;;  %v225_v25 = vpack.c.bf16 %v217_v13, %v217_v13  ;;  %v236_v0 = vld [vmem:[%s205_s24] sm:$0xff]  ;;  %v238_v3 = vld [vmem:[%s205_s24 + $0x10] sm:$0xff]  ;;  %v239_v4 = vld [vmem:[%s205_s24 + $0x18] sm:$0xff] }
  0x13   : > { %v247_v24 = vunpack.c.l.b16 %v221_v11  ;;  %338 = vmatpush.bf16.xpose.msra.mxu3 %v329_v17  ;;  %288 = vmatpush.bf16.xpose.msra.mxu1 %v279_v22  ;;  %v227_v28 = vpack.c.bf16 %v219_v19, %v219_v19  ;;  %v222_v29 = vpack.c.bf16 %v214_v20, %v214_v20  ;;  %v223_v31 = vpack.c.bf16 %v215_v21, %v215_v21  ;;  %v237_v11 = vld [vmem:[%s205_s24 + $0x8] sm:$0xff] }
  0x14   : > { %v297_v26 = vunpack.c.l.b16 %v224_v18  ;;  %v298_v30 = vunpack.c.l.b16 %v225_v25  ;;  %v322_v33 = vunpack.c.l.b16 %v226_v27  ;;  %v240_v1 = vpack.c.bf16 %v236_v0, %v236_v0 }
  0x15   : > { %v248_v32 = vpack.c.b16 %v247_v24, %v246_v23  ;;  %v323_v34 = vunpack.c.l.b16 %v227_v28  ;;  %v272_v35 = vunpack.c.l.b16 %v222_v29  ;;  %v273_v37 = vunpack.c.l.b16 %v223_v31 }
  0x16   : > { %v299_v36 = vpack.c.b16 %v298_v30, %v297_v26  ;;  %v443_v2 = vsel %vm441_vm1, %v240_v1, 0  ;;  %v242_v5 = vpack.c.bf16 %v238_v3, %v238_v3  ;;  %v243_v6 = vpack.c.bf16 %v239_v4, %v239_v4 }
  0x17   : > { %v324_v38 = vpack.c.b16 %v323_v34, %v322_v33  ;;  %v274_v39 = vpack.c.b16 %v273_v37, %v272_v35  ;;  %v241_v13 = vpack.c.bf16 %v237_v11, %v237_v11 }
  0x18   : > { %v493_v7 = vsel %vm441_vm1, %v242_v5, 0  ;;  %v518_v8 = vsel %vm441_vm1, %v243_v6, 0 }
  0x19   : > { %650 = vmatmul.msk.bf16.vlgmr.msra.gmra.mxu0 %vm249_vm0, %v248_v32  ;;  %652 = vmatmul.msk.bf16.vlgmr.msra.gmra.mxu2 %vm249_vm0, %v299_v36  ;;  %v468_v14 = vsel %vm441_vm1, %v241_v13, 0 }
  0x1a   : > { %653 = vmatmul.msk.bf16.vlgmr.msra.gmra.mxu3 %vm249_vm0, %v324_v38  ;;  %651 = vmatmul.msk.bf16.vlgmr.msra.gmra.mxu1 %vm249_vm0, %v274_v39 }
  0x1b   : > { %452 = vmatpush.bf16.msrb.mxu0 %v443_v2  ;;  %502 = vmatpush.bf16.msrb.mxu2 %v493_v7 }
  0x1c   : > { %527 = vmatpush.bf16.msrb.mxu3 %v518_v8  ;;  %477 = vmatpush.bf16.msrb.mxu1 %v468_v14 }
  0x96   : > { %v265_v40 = vpop.f32.mrf.mxu0 }
  0x97   : > { %v345_v41 = vmul.f32 0.35355338, %v265_v40  ;;  %v290_v48 = vpop.f32.mrf.mxu1 }
  0x98   : > { %v768_v60 = vmul.f32 0.35355338, %v290_v48 }
  0x99   : > { %v353_v42 = vsel %vm249_vm0, %v345_v41, -inf }
  0x9a   : > { %354 = vmax.xlane.f32.xlu2 %v353_v42  ;;  %v359_v62 = vsel %vm249_vm0, %v768_v60, -inf }
  0x9c   : > { %v315_v43 = vpop.f32.mrf.mxu2 }
  0x9d   : > { %v349_v44 = vmul.f32 0.35355338, %v315_v43  ;;  %v340_v45 = vpop.f32.mrf.mxu3 }
  0x9e   : > { %v351_v46 = vmul.f32 0.35355338, %v340_v45  ;;  %v267_v47 = vpop.f32.mrf.mxu0 }
  0x9f   : > { %v346_v49 = vmul.f32 0.35355338, %v267_v47  ;;  %v365_v50 = vsel %vm249_vm0, %v349_v44, -inf  ;;  %v292_v59 = vpop.f32.mrf.mxu1 }
  0xa0   : > { %v371_v51 = vsel %vm249_vm0, %v351_v46, -inf  ;;  %366 = vmax.xlane.f32.xlu0 %v365_v50  ;;  %v770_v61 = vmul.f32 0.35355338, %v292_v59 }
  0xa1   : > { %372 = vmax.xlane.f32.xlu1 %v371_v51  ;;  %v356_v52 = vsel %vm249_vm0, %v346_v49, -inf }
  0xa2   : > { %357 = vmax.xlane.f32.xlu2 %v356_v52  ;;  %v362_v63 = vsel %vm249_vm0, %v770_v61, -inf }
  0xa4   : > { %v317_v53 = vpop.f32.mrf.mxu2 }
  0xa5   : > { %v350_v54 = vmul.f32 0.35355338, %v317_v53  ;;  %v342_v55 = vpop.f32.mrf.mxu3 }
  0xa6   : > { %v352_v56 = vmul.f32 0.35355338, %v342_v55 }
  0xa7   : > { %v368_v57 = vsel %vm249_vm0, %v350_v54, -inf }
  0xa8   : > { %v374_v58 = vsel %vm249_vm0, %v352_v56, -inf  ;;  %369 = vmax.xlane.f32.xlu0 %v368_v57 }
  0xa9   : > { %375 = vmax.xlane.f32.xlu1 %v374_v58 }
  0xb0   : > { %360 = vmax.xlane.f32.xlu0 %v359_v62 }
  0xb1   : > { %363 = vmax.xlane.f32.xlu1 %v362_v63 }
 0x10d   : > { %v355_v9 = vpop.xlane.xlu2 %354 }
 0x10e   : > { %v377_v10 = vsub.f32 %v345_v41, %v355_v9 }
 0x110   : > { %v385_v12 = vmul.f32 1.442695, %v377_v10 }
 0x112   : > { %672 = vpow2.f32 %v385_v12 }
 0x113   : > { %v367_v15 = vpop.xlane.xlu0 %366 }
 0x114   : > { %v373_v16 = vpop.xlane.xlu1 %372  ;;  %v381_v17 = vsub.f32 %v349_v44, %v367_v15 }
 0x115   : > { %v383_v18 = vsub.f32 %v351_v46, %v373_v16  ;;  %v358_v19 = vpop.xlane.xlu2 %357 }
 0x116   : > { %v393_v20 = vmul.f32 1.442695, %v381_v17  ;;  %v378_v21 = vsub.f32 %v346_v49, %v358_v19 }
 0x117   : > { %v397_v24 = vmul.f32 1.442695, %v383_v18 }
 0x118   : > { %v673_v22 = vpop.eup %672  ;;  %674 = vpow2.f32 %v393_v20  ;;  %v387_v23 = vmul.f32 1.442695, %v378_v21 }
 0x119   : > { %v401_v25 = vsel %vm249_vm0, %v673_v22, 0.0  ;;  %v425_v32 = vpack.c.bf16 %v673_v22, %v673_v22 }
 0x11a   : > { %676 = vpow2.f32 %v387_v23  ;;  %402 = vadd.xlane.f32.xlu2 %v401_v25 }
 0x11b   : > { %v370_v26 = vpop.xlane.xlu0 %369  ;;  %678 = vpow2.f32 %v397_v24  ;;  %v435_v38 = vunpack.c.l.b16 %v425_v32 }
 0x11c   : > { %v376_v27 = vpop.xlane.xlu1 %375  ;;  %v382_v28 = vsub.f32 %v350_v54, %v370_v26 }
 0x11d   : > { %v384_v29 = vsub.f32 %v352_v56, %v376_v27 }
 0x11e   : > { %v675_v30 = vpop.eup %674  ;;  %v395_v31 = vmul.f32 1.442695, %v382_v28 }
 0x11f   : > { %v399_v33 = vmul.f32 1.442695, %v384_v29  ;;  %v413_v34 = vsel %vm249_vm0, %v675_v30, 0.0  ;;  %v429_v43 = vpack.c.bf16 %v675_v30, %v675_v30 }
 0x120   : > { %v677_v35 = vpop.eup %676  ;;  %680 = vpow2.f32 %v395_v31  ;;  %414 = vadd.xlane.f32.xlu0 %v413_v34 }
 0x121   : > { %v426_v36 = vpack.c.bf16 %v677_v35, %v677_v35  ;;  %682 = vpow2.f32 %v399_v33  ;;  %v679_v37 = vpop.eup %678  ;;  %v404_v52 = vsel %vm249_vm0, %v677_v35, 0.0  ;;  %v486_v54 = vunpack.c.l.b16 %v429_v43 }
 0x122   : > { %v431_v47 = vpack.c.bf16 %v679_v37, %v679_v37  ;;  %v419_v7 = vsel %vm249_vm0, %v679_v37, 0.0 }
 0x123   : > { %v436_v39 = vunpack.c.l.b16 %v426_v36  ;;  %v361_v40 = vpop.xlane.xlu0 %360 }
 0x124   : > { %v379_v41 = vsub.f32 %v768_v60, %v361_v40  ;;  %v364_v42 = vpop.xlane.xlu1 %363  ;;  %v511_v56 = vunpack.c.l.b16 %v431_v47 }
 0x125   : > { %v380_v44 = vsub.f32 %v770_v61, %v364_v42  ;;  %v437_v45 = vpack.c.b16 %v436_v39, %v435_v38 }
 0x126   : > { %v681_v46 = vpop.eup %680  ;;  %v389_v48 = vmul.f32 1.442695, %v379_v41 }
 0x127   : > { %v683_v49 = vpop.eup %682  ;;  %v430_v50 = vpack.c.bf16 %v681_v46, %v681_v46  ;;  %v391_v51 = vmul.f32 1.442695, %v380_v44  ;;  %654 = vmatmul.msk.bf16.vlgmr.msrb.gmra.mxu0 %vm249_vm0, %v437_v45  ;;  %v416_v6 = vsel %vm249_vm0, %v681_v46, 0.0 }
 0x128   : > { %v432_v53 = vpack.c.bf16 %v683_v49, %v683_v49  ;;  %684 = vpow2.f32 %v389_v48  ;;  %405 = vadd.xlane.f32.xlu0 %v404_v52  ;;  %v422_v0 = vsel %vm249_vm0, %v683_v49, 0.0 }
 0x129   : > { %v487_v55 = vunpack.c.l.b16 %v430_v50  ;;  %686 = vpow2.f32 %v391_v51 }
 0x12a   : > { %v512_v57 = vunpack.c.l.b16 %v432_v53 }
 0x12b   : > { %v488_v58 = vpack.c.b16 %v487_v55, %v486_v54 }
 0x12c   : > { %v513_v59 = vpack.c.b16 %v512_v57, %v511_v56 }
 0x12d   : > { %656 = vmatmul.msk.bf16.vlgmr.msrb.gmra.mxu2 %vm249_vm0, %v488_v58 }
 0x12e   : > { %v685_v60 = vpop.eup %684  ;;  %657 = vmatmul.msk.bf16.vlgmr.msrb.gmra.mxu3 %vm249_vm0, %v513_v59 }
 0x12f   : > { %v687_v61 = vpop.eup %686  ;;  %v427_v62 = vpack.c.bf16 %v685_v60, %v685_v60  ;;  %v407_v63 = vsel %vm249_vm0, %v685_v60, 0.0 }
 0x130   : > { %v428_v1 = vpack.c.bf16 %v687_v61, %v687_v61  ;;  %408 = vadd.xlane.f32.xlu1 %v407_v63  ;;  %v410_v2 = vsel %vm249_vm0, %v687_v61, 0.0  ;;  %423 = vadd.xlane.f32.xlu0 %v422_v0 }
 0x131   : > { %v461_v3 = vunpack.c.l.b16 %v427_v62  ;;  %411 = vadd.xlane.f32.xlu2 %v410_v2 }
 0x132   : > { %v462_v4 = vunpack.c.l.b16 %v428_v1 }
 0x134   : > { %v463_v5 = vpack.c.b16 %v462_v4, %v461_v3 }
 0x136   : > { %655 = vmatmul.msk.bf16.vlgmr.msrb.gmra.mxu1 %vm249_vm0, %v463_v5 }
 0x138   : > { %417 = vadd.xlane.f32.xlu1 %v416_v6 }
 0x139   : > { %420 = vadd.xlane.f32.xlu2 %v419_v7 }
 0x18d   : > { %v403_v9 = vpop.xlane.xlu2 %402 }
 0x18e   : > { %688 = vrcp.f32 %v403_v9 }
 0x193   : > { %v415_v8 = vpop.xlane.xlu0 %414 }
 0x194   : > { %v689_v11 = vpop.eup %688 }
 0x19b   : > { %v406_v10 = vpop.xlane.xlu0 %405 }
 0x19c   : > { %690 = vrcp.f32 %v406_v10 }
 0x19d   : > { %692 = vrcp.f32 %v415_v8 }
 0x1a2   : > { %v691_v16 = vpop.eup %690 }
 0x1a3   : > { %v409_v14 = vpop.xlane.xlu1 %408  ;;  %v693_v21 = vpop.eup %692 }
 0x1a4   : > { %v412_v12 = vpop.xlane.xlu2 %411  ;;  %v454_v13 = vpop.f32.mrf.mxu0  ;;  %694 = vrcp.f32 %v409_v14 }
 0x1a5   : > { %v542_v15 = vmul.f32 %v689_v11, %v454_v13  ;;  %v424_v22 = vpop.xlane.xlu0 %423 }
 0x1a7   : > { %550 = vst.msk [vmem:[%s804_s27] sm:$0xff] %vm249_vm0, %v542_v15 }
 0x1aa   : > { %v695_v26 = vpop.eup %694 }
 0x1ab   : > { %v418_v20 = vpop.xlane.xlu1 %417 }
 0x1ac   : > { %v421_v17 = vpop.xlane.xlu2 %420  ;;  %v456_v18 = vpop.f32.mrf.mxu0 }
 0x1ad   : > { %696 = vrcp.f32 %v421_v17  ;;  %v543_v19 = vmul.f32 %v691_v16, %v456_v18 }
 0x1ae   : > { %698 = vrcp.f32 %v418_v20 }
 0x1af   : > { %551 = vst.msk [vmem:[%s804_s27 + $0x8] sm:$0xff] %vm249_vm0, %v543_v19  ;;  %700 = vrcp.f32 %v424_v22 }
 0x1b0   : > { %v504_v23 = vpop.f32.mrf.mxu2  ;;  %702 = vrcp.f32 %v412_v12 }
 0x1b1   : > { %v546_v24 = vmul.f32 %v693_v21, %v504_v23  ;;  %v529_v25 = vpop.f32.mrf.mxu3 }
 0x1b3   : > { %v697_v27 = vpop.eup %696  ;;  %554 = vst.msk [vmem:[%s804_s27 + $0x20] sm:$0xff] %vm249_vm0, %v546_v24  ;;  %v479_v28 = vpop.f32.mrf.mxu1 }
 0x1b4   : > { %v548_v29 = vmul.f32 %v697_v27, %v529_v25  ;;  %v544_v30 = vmul.f32 %v695_v26, %v479_v28  ;;  %v699_v31 = vpop.eup %698 }
 0x1b5   : > { %v701_v33 = vpop.eup %700 }
 0x1b6   : > { %556 = vst.msk [vmem:[%s804_s27 + $0x30] sm:$0xff] %vm249_vm0, %v548_v29  ;;  %v703_v37 = vpop.eup %702 }
 0x1b7   : > { %552 = vst.msk [vmem:[%s804_s27 + $0x10] sm:$0xff] %vm249_vm0, %v544_v30 }
 0x1b8   : > { %v506_v32 = vpop.f32.mrf.mxu2 }
 0x1b9   : > { %v547_v34 = vmul.f32 %v699_v31, %v506_v32  ;;  %v531_v35 = vpop.f32.mrf.mxu3 }
 0x1ba   : > { %v549_v36 = vmul.f32 %v701_v33, %v531_v35 }
 0x1bb   : > { %555 = vst.msk [vmem:[%s804_s27 + $0x28] sm:$0xff] %vm249_vm0, %v547_v34  ;;  %v481_v38 = vpop.f32.mrf.mxu1 }
 0x1bc   : > { %557 = vst.msk [vmem:[%s804_s27 + $0x38] sm:$0xff] %vm249_vm0, %v549_v36  ;;  %v545_v39 = vmul.f32 %v703_v37, %v481_v38 }
 0x1be   : > { %553 = vst.msk [vmem:[%s804_s27 + $0x18] sm:$0xff] %vm249_vm0, %v545_v39 }
 0x1bf PF: > { %s13_s12 = sadd.s32 1, %s710_s12  }
 0x1c0   : > { %p10_p4 = scmp.ge.s32.totalorder %s13_s12, 4  }
 0x1c2   :  { %12 = sbr.rel (!%p10_p4) target bundleno = 1 (0x1), region = 68 }

// kernel: acoustic_generator_forward.50
= control target key start
LH: loop header
LB: loop body
LE: loop exit
PB: predicated region body
PF: predicated region fallthrough
CT: control target
= control target key end

     0   :  { %vm29_vm0 = vcmask 261120   ;;  %v162_v16 = vmov 32.0   ;;  %s262_s0 = inlined_call_operand.vmem [shape: f32[32,32], index: 0, kind: input, shape index: {}]   ;;  %s263_s1 = inlined_call_operand.vmem [shape: f32[32,32], index: 1, kind: input, shape index: {}]   ;;  %s264_s2 = inlined_call_operand.vmem [shape: f32[1,32], index: 2, kind: input, shape index: {}]   ;;  %s265_s3 = inlined_call_operand.vmem [shape: f32[1,32], index: 3, kind: input, shape index: {}]   ;;  %s266_s4 = inlined_call_operand.vmem [shape: f32[32,32], index: 4, kind: output, shape index: {}]  }
   0x1   :  { %v19_v0 = vld [vmem:[%s262_s0 + $0x10] sm:$0xff]  ;;  %v17_v2 = vld [vmem:[%s262_s0] sm:$0xff]  ;;  %v20_v6 = vld [vmem:[%s262_s0 + $0x18] sm:$0xff]  ;;  %152 = vrcp.f32 %v162_v16 }
   0x2   :  { %v23_v1 = vld [vmem:[%s263_s1 + $0x10] sm:$0xff]  ;;  %v21_v4 = vld [vmem:[%s263_s1] sm:$0xff]  ;;  %v24_v7 = vld [vmem:[%s263_s1 + $0x18] sm:$0xff] }
   0x3   :  { %v27_v3 = vadd.f32 %v23_v1, %v19_v0  ;;  %v25_v5 = vadd.f32 %v21_v4, %v17_v2  ;;  %v18_v9 = vld [vmem:[%s262_s0 + $0x8] sm:$0xff]  ;;  %v28_v12 = vadd.f32 %v24_v7, %v20_v6 }
   0x4   :  { %v22_v10 = vld [vmem:[%s263_s1 + $0x8] sm:$0xff] }
   0x5   :  { %v36_v8 = vsel %vm29_vm0, %v27_v3, 0.0  ;;  %v30_v11 = vsel %vm29_vm0, %v25_v5, 0.0  ;;  %v26_v13 = vadd.f32 %v22_v10, %v18_v9  ;;  %v39_v14 = vsel %vm29_vm0, %v28_v12, 0.0  ;;  %v151_v10 = vld [vmem:[%s265_s3] ss:$0 sm:$0xff] }
   0x6   :  { %37 = vadd.xlane.f32.xlu1 %v36_v8  ;;  %31 = vadd.xlane.f32.xlu0 %v30_v11 }
   0x7   :  { %v33_v15 = vsel %vm29_vm0, %v26_v13, 0.0  ;;  %v153_v17 = vpop.eup %152 }
   0x8   :  { %v43_v18 = vmul.f32 32.0, %v153_v17  ;;  %vm47_vm1 = vweird.f32 %v153_v17 }
   0xa   :  { %v44_v19 = vsub.f32 1.0, %v43_v18 }
   0xc   :  { %v45_v20 = vmul.f32 %v153_v17, %v44_v19 }
   0xe   :  { %40 = vadd.xlane.f32.xlu1 %v39_v14  ;;  %34 = vadd.xlane.f32.xlu0 %v33_v15  ;;  %v46_v21 = vadd.f32 %v153_v17, %v45_v20 }
  0x10   :  { %v48_v22 = vsel %vm47_vm1, %v153_v17, %v46_v21 }
  0x79   :  { %v38_v23 = vpop.xlane.xlu1 %37  ;;  %v32_v25 = vpop.xlane.xlu0 %31 }
  0x7a   :  { %v51_v24 = vmul.f32 %v48_v22, %v38_v23  ;;  %v49_v26 = vmul.f32 %v48_v22, %v32_v25 }
  0x7c   :  { %v216_v27 = vsub.f32 %v27_v3, %v51_v24  ;;  %v218_v28 = vsub.f32 %v25_v5, %v49_v26  ;;  %v150_v5 = vld [vmem:[%s264_s2] ss:$0 sm:$0xff] }
  0x7e   :  { %v59_v29 = vmul.f32 %v216_v27, %v216_v27  ;;  %v57_v30 = vmul.f32 %v218_v28, %v218_v28 }
  0x80   :  { %v67_v31 = vsel %vm29_vm0, %v59_v29, 0.0  ;;  %v61_v33 = vsel %vm29_vm0, %v57_v30, 0.0 }
  0x81   :  { %v41_v32 = vpop.xlane.xlu1 %40  ;;  %68 = vadd.xlane.f32.xlu0 %v67_v31  ;;  %62 = vadd.xlane.f32.xlu2 %v61_v33  ;;  %v35_v35 = vpop.xlane.xlu0 %34 }
  0x82   :  { %v52_v34 = vmul.f32 %v48_v22, %v41_v32  ;;  %v50_v36 = vmul.f32 %v48_v22, %v35_v35 }
  0x84   :  { %v226_v37 = vsub.f32 %v28_v12, %v52_v34  ;;  %v228_v38 = vsub.f32 %v26_v13, %v50_v36 }
  0x86   :  { %v60_v39 = vmul.f32 %v226_v37, %v226_v37  ;;  %v58_v40 = vmul.f32 %v228_v38, %v228_v38 }
  0x88   :  { %v70_v41 = vsel %vm29_vm0, %v60_v39, 0.0  ;;  %v64_v42 = vsel %vm29_vm0, %v58_v40, 0.0 }
  0x89   :  { %71 = vadd.xlane.f32.xlu1 %v70_v41  ;;  %65 = vadd.xlane.f32.xlu2 %v64_v42 }
  0xf4   :  { %v69_v43 = vpop.xlane.xlu0 %68  ;;  %v63_v44 = vpop.xlane.xlu2 %62 }
  0xf5   :  { %v75_v45 = vmul.f32 %v69_v43, %v48_v22  ;;  %v73_v46 = vmul.f32 %v63_v44, %v48_v22 }
  0xf7   :  { %v79_v47 = vadd.f32 1e-05, %v75_v45  ;;  %v77_v48 = vadd.f32 1e-05, %v73_v46 }
  0xf9   :  { %154 = vrsqrt.f32 %v79_v47  ;;  %vm107_vm4 = vweird.f32 %v79_v47  ;;  %vm87_vm5 = vweird.f32 %v77_v48 }
  0xfa   :  { %156 = vrsqrt.f32 %v77_v48 }
  0xfc   :  { %v72_v49 = vpop.xlane.xlu1 %71  ;;  %v66_v51 = vpop.xlane.xlu2 %65 }
  0xfd   :  { %v76_v50 = vmul.f32 %v72_v49, %v48_v22  ;;  %v74_v52 = vmul.f32 %v66_v51, %v48_v22 }
  0xff   :  { %v155_v53 = vpop.eup %154  ;;  %v80_v54 = vadd.f32 1e-05, %v76_v50  ;;  %v78_v57 = vadd.f32 1e-05, %v74_v52 }
 0x100   :  { %v157_v55 = vpop.eup %156  ;;  %v102_v56 = vmul.f32 %v155_v53, %v79_v47  ;;  %vm108_vm2 = vweird.f32 %v155_v53 }
 0x101   :  { %v82_v58 = vmul.f32 %v157_v55, %v77_v48  ;;  %158 = vrsqrt.f32 %v80_v54  ;;  %vm88_vm3 = vweird.f32 %v157_v55  ;;  %vm109_vm6 = vmor %vm107_vm4, %vm108_vm2  ;;  %vm117_vm10 = vweird.f32 %v80_v54 }
 0x102   :  { %v103_v59 = vmul.f32 %v155_v53, %v102_v56  ;;  %160 = vrsqrt.f32 %v78_v57  ;;  %vm89_vm7 = vmor %vm87_vm5, %vm88_vm3  ;;  %vm97_vm12 = vweird.f32 %v78_v57 }
 0x103   :  { %v83_v60 = vmul.f32 %v157_v55, %v82_v58 }
 0x104   :  { %v104_v61 = vmul.f32 0.5, %v103_v59 }
 0x105   :  { %v84_v62 = vmul.f32 0.5, %v83_v60 }
 0x106   :  { %v105_v63 = vsub.f32 1.5, %v104_v61 }
 0x107   :  { %v159_v0 = vpop.eup %158  ;;  %v85_v1 = vsub.f32 1.5, %v84_v62 }
 0x108   :  { %v161_v2 = vpop.eup %160  ;;  %v106_v3 = vmul.f32 %v155_v53, %v105_v63  ;;  %v112_v4 = vmul.f32 %v159_v0, %v80_v54  ;;  %vm118_vm8 = vweird.f32 %v159_v0 }
 0x109   :  { %v86_v6 = vmul.f32 %v157_v55, %v85_v1  ;;  %v92_v7 = vmul.f32 %v161_v2, %v78_v57  ;;  %vm98_vm9 = vweird.f32 %v161_v2  ;;  %vm119_vm11 = vmor %vm117_vm10, %vm118_vm8 }
 0x10a   :  { %v110_v8 = vsel %vm109_vm6, %v155_v53, %v106_v3  ;;  %v113_v9 = vmul.f32 %v159_v0, %v112_v4  ;;  %vm99_vm13 = vmor %vm97_vm12, %vm98_vm9 }
 0x10b   :  { %v90_v11 = vsel %vm89_vm7, %v157_v55, %v86_v6  ;;  %v123_v12 = vmul.f32 %v110_v8, %v216_v27  ;;  %v93_v13 = vmul.f32 %v161_v2, %v92_v7 }
 0x10c   :  { %v121_v14 = vmul.f32 %v90_v11, %v218_v28  ;;  %v114_v15 = vmul.f32 0.5, %v113_v9 }
 0x10d   :  { %v131_v16 = vmul.f32 %v150_v5, %v123_v12  ;;  %v94_v17 = vmul.f32 0.5, %v93_v13 }
 0x10e   :  { %v129_v18 = vmul.f32 %v150_v5, %v121_v14  ;;  %v115_v19 = vsub.f32 1.5, %v114_v15 }
 0x10f   :  { %v139_v20 = vadd.f32 %v151_v10, %v131_v16  ;;  %v95_v21 = vsub.f32 1.5, %v94_v17 }
 0x110   :  { %v137_v22 = vadd.f32 %v151_v10, %v129_v18  ;;  %v116_v23 = vmul.f32 %v159_v0, %v115_v19 }
 0x111   :  { %143 = vst.msk [vmem:[%s266_s4 + $0x10] sm:$0xff] %vm29_vm0, %v139_v20  ;;  %v96_v24 = vmul.f32 %v161_v2, %v95_v21 }
 0x112   :  { %141 = vst.msk [vmem:[%s266_s4] sm:$0xff] %vm29_vm0, %v137_v22  ;;  %v120_v25 = vsel %vm119_vm11, %v159_v0, %v116_v23 }
 0x113   :  { %v124_v26 = vmul.f32 %v120_v25, %v226_v37  ;;  %v100_v27 = vsel %vm99_vm13, %v161_v2, %v96_v24 }
 0x114   :  { %v122_v28 = vmul.f32 %v100_v27, %v228_v38 }
 0x115   :  { %v132_v29 = vmul.f32 %v150_v5, %v124_v26 }
 0x116   :  { %v130_v30 = vmul.f32 %v150_v5, %v122_v28 }
 0x117   :  { %v140_v31 = vadd.f32 %v151_v10, %v132_v29 }
 0x118   :  { %v138_v32 = vadd.f32 %v151_v10, %v130_v30 }
 0x119   :  { %144 = vst.msk [vmem:[%s266_s4 + $0x18] sm:$0xff] %vm29_vm0, %v140_v31 }
 0x11a   :  { %142 = vst.msk [vmem:[%s266_s4 + $0x8] sm:$0xff] %vm29_vm0, %v138_v32 }

// kernel: tile.7
= control target key start
LH: loop header
LB: loop body
LE: loop exit
PB: predicated region body
PF: predicated region fallthrough
CT: control target
= control target key end

     0   :  { %s520_s0 = inlined_call_operand.vmem [shape: f32[2,16,3,128], index: 0, kind: input, shape index: {}]   ;;  %s521_s1 = inlined_call_operand.vmem [shape: f32[2,16,384], index: 1, kind: output, shape index: {}]  }
   0x1   :  { %v256_v0 = vld [vmem:[%s520_s0 + $0x7c] sm:$0xf]  ;;  %v257_v1 = vld [vmem:[%s520_s0 + $0x78] sm:$0xf]  ;;  %v258_v2 = vld [vmem:[%s520_s0 + $0x74] sm:$0xf] }
   0x2   :  { %7 = vst [vmem:[#allocation0 + $0x48] sm:$0xf] %v256_v0  ;;  %v259_v3 = vld [vmem:[%s520_s0 + $0x70] sm:$0xf]  ;;  %v260_v4 = vld [vmem:[%s520_s0 + $0x6c] sm:$0xf] }
   0x3   :  { %11 = vst [vmem:[#allocation0 + $0xf8] sm:$0xf] %v257_v1  ;;  %v261_v5 = vld [vmem:[%s520_s0 + $0x68] sm:$0xf]  ;;  %v262_v6 = vld [vmem:[%s520_s0 + $0x64] sm:$0xf] }
   0x4   :  { %15 = vst [vmem:[#allocation0 + $0x20] sm:$0xf] %v258_v2  ;;  %v263_v7 = vld [vmem:[%s520_s0 + $0x60] sm:$0xf]  ;;  %v264_v8 = vld [vmem:[%s520_s0 + $0x5c] sm:$0xf] }
   0x5   :  { %19 = vst [vmem:[#allocation0 + $0xe0] sm:$0xf] %v259_v3  ;;  %v265_v9 = vld [vmem:[%s520_s0 + $0x58] sm:$0xf]  ;;  %v266_v10 = vld [vmem:[%s520_s0 + $0x54] sm:$0xf] }
   0x6   :  { %23 = vst [vmem:[#allocation0 + $0xa8] sm:$0xf] %v260_v4  ;;  %v267_v11 = vld [vmem:[%s520_s0 + $0x50] sm:$0xf]  ;;  %v268_v12 = vld [vmem:[%s520_s0 + $0x4c] sm:$0xf] }
   0x7   :  { %27 = vst [vmem:[#allocation0 + $0x90] sm:$0xf] %v261_v5  ;;  %v269_v13 = vld [vmem:[%s520_s0 + $0x48] sm:$0xf]  ;;  %v270_v14 = vld [vmem:[%s520_s0 + $0x44] sm:$0xf] }
   0x8   :  { %31 = vst [vmem:[#allocation0 + $0xc8] sm:$0xf] %v262_v6  ;;  %v271_v15 = vld [vmem:[%s520_s0 + $0x40] sm:$0xf]  ;;  %v272_v16 = vld [vmem:[%s520_s0 + $0x3c] sm:$0xf] }
   0x9   :  { %35 = vst [vmem:[#allocation0 + $0xb0] sm:$0xf] %v263_v7  ;;  %v273_v17 = vld [vmem:[%s520_s0 + $0x38] sm:$0xf]  ;;  %v274_v18 = vld [vmem:[%s520_s0 + $0x34] sm:$0xf] }
   0xa   :  { %39 = vst [vmem:[#allocation0 + $0x78] sm:$0xf] %v264_v8  ;;  %v275_v19 = vld [vmem:[%s520_s0 + $0x30] sm:$0xf]  ;;  %v276_v20 = vld [vmem:[%s520_s0 + $0x2c] sm:$0xf] }
   0xb   :  { %43 = vst [vmem:[#allocation0 + $0x70] sm:$0xf] %v265_v9  ;;  %v277_v21 = vld [vmem:[%s520_s0 + $0x28] sm:$0xf]  ;;  %v278_v22 = vld [vmem:[%s520_s0 + $0x24] sm:$0xf] }
   0xc   :  { %47 = vst [vmem:[#allocation0 + $0x10] sm:$0xf] %v266_v10  ;;  %v279_v23 = vld [vmem:[%s520_s0 + $0x20] sm:$0xf]  ;;  %v280_v24 = vld [vmem:[%s520_s0 + $0x1c] sm:$0xf] }
   0xd   :  { %51 = vst [vmem:[#allocation0 + $0x40] sm:$0xf] %v267_v11  ;;  %v281_v25 = vld [vmem:[%s520_s0 + $0x18] sm:$0xf]  ;;  %v282_v26 = vld [vmem:[%s520_s0 + $0x14] sm:$0xf] }
   0xe   :  { %55 = vst [vmem:[#allocation0 + $0x98] sm:$0xf] %v268_v12  ;;  %v283_v27 = vld [vmem:[%s520_s0 + $0x10] sm:$0xf]  ;;  %v284_v28 = vld [vmem:[%s520_s0 + $0xc] sm:$0xf] }
   0xf   :  { %59 = vst [vmem:[#allocation0 + $0x8] sm:$0xf] %v269_v13  ;;  %v285_v29 = vld [vmem:[%s520_s0 + $0x8] sm:$0xf]  ;;  %v286_v30 = vld [vmem:[%s520_s0 + $0x4] sm:$0xf] }
  0x10   :  { %63 = vst [vmem:[#allocation0 + $0xf0] sm:$0xf] %v270_v14  ;;  %v128_v31 = vld [vmem:[%s520_s0] sm:$0xf]  ;;  %v225_v56 = vld [vmem:[#allocation0 + $0xb0] sm:$0x7]  }
  0x11   :  { %67 = vst [vmem:[#allocation0 + $0x80] sm:$0xf] %v271_v15  ;;  %v221_v55 = vld [vmem:[#allocation0 + $0x78] sm:$0x7]   ;;  %v229_v57 = vld [vmem:[#allocation0 + $0xc8] sm:$0x7]  }
  0x12   :  { %71 = vst [vmem:[#allocation0 + $0xc0] sm:$0xf] %v272_v16  ;;  %v217_v54 = vld [vmem:[#allocation0 + $0x70] sm:$0x7]   ;;  %v237_v59 = vld [vmem:[#allocation0 + $0xa8] sm:$0x7]  }
  0x13   :  { %75 = vst [vmem:[#allocation0 + $0xa0] sm:$0xf] %v273_v17  ;;  %v213_v53 = vld [vmem:[#allocation0 + $0x10] sm:$0x7]   ;;  %v241_v60 = vld [vmem:[#allocation0 + $0xe0] sm:$0x7]  }
  0x14   :  { %79 = vst [vmem:[#allocation0 + $0xb8] sm:$0xf] %v274_v18  ;;  %v209_v52 = vld [vmem:[#allocation0 + $0x40] sm:$0x7]   ;;  %v233_v58 = vld [vmem:[#allocation0 + $0x90] sm:$0x7]  }
  0x15   :  { %83 = vst [vmem:[#allocation0 + $0x30] sm:$0xf] %v275_v19  ;;  %v205_v51 = vld [vmem:[#allocation0 + $0x98] sm:$0x7]   ;;  %v245_v61 = vld [vmem:[#allocation0 + $0x20] sm:$0x7]  }
  0x16   :  { %87 = vst [vmem:[#allocation0 + $0x18] sm:$0xf] %v276_v20  ;;  %v201_v50 = vld [vmem:[#allocation0 + $0x8] sm:$0x7]   ;;  %v249_v62 = vld [vmem:[#allocation0 + $0xf8] sm:$0x7]  }
  0x17   :  { %91 = vst [vmem:[#allocation0 + $0x68] sm:$0xf] %v277_v21  ;;  %v197_v49 = vld [vmem:[#allocation0 + $0xf0] sm:$0x7]   ;;  %v253_v63 = vld [vmem:[#allocation0 + $0x48] sm:$0x7]  }
  0x18   :  { %95 = vst [vmem:[#allocation0 + $0x88] sm:$0xf] %v278_v22  ;;  %v193_v48 = vld [vmem:[#allocation0 + $0x80] sm:$0x7]  }
  0x19   :  { %99 = vst [vmem:[#allocation0 + $0x38] sm:$0xf] %v279_v23  ;;  %v189_v47 = vld [vmem:[#allocation0 + $0xc0] sm:$0x7]  }
  0x1a   :  { %103 = vst [vmem:[#allocation0 + $0x50] sm:$0xf] %v280_v24  ;;  %v185_v46 = vld [vmem:[#allocation0 + $0xa0] sm:$0x7]  }
  0x1b   :  { %107 = vst [vmem:[#allocation0 + $0x28] sm:$0xf] %v281_v25  ;;  %v181_v45 = vld [vmem:[#allocation0 + $0xb8] sm:$0x7]  }
  0x1c   :  { %111 = vst [vmem:[#allocation0 + $0xe8] sm:$0xf] %v282_v26  ;;  %v177_v44 = vld [vmem:[#allocation0 + $0x30] sm:$0x7]  }
  0x1d   :  { %115 = vst [vmem:[#allocation0 + $0xd0] sm:$0xf] %v283_v27  ;;  %v173_v43 = vld [vmem:[#allocation0 + $0x18] sm:$0x7]  }
  0x1e   :  { %119 = vst [vmem:[#allocation0 + $0x58] sm:$0xf] %v284_v28  ;;  %v169_v42 = vld [vmem:[#allocation0 + $0x68] sm:$0x7]  }
  0x1f   :  { %123 = vst [vmem:[#allocation0] sm:$0xf] %v285_v29  ;;  %v165_v39 = vld [vmem:[#allocation0 + $0x88] sm:$0x7]  }
  0x20   :  { %127 = vst [vmem:[#allocation0 + $0xd8] sm:$0xf] %v286_v30  ;;  %v161_v37 = vld [vmem:[#allocation0 + $0x38] sm:$0x7]  }
  0x21   :  { %129 = vst [vmem:[#allocation0 + $0x60] sm:$0xf] %v128_v31  ;;  %v157_v32 = vld [vmem:[#allocation0 + $0x50] sm:$0x7]  }
  0x22   :  { %v153_v33 = vld [vmem:[#allocation0 + $0x28] sm:$0x7]   ;;  %293 = vst [vmem:[%s521_s1 + $0x7] ss:$8 sm:$0x7] %v157_v32  }
  0x23   :  { %v149_v34 = vld [vmem:[#allocation0 + $0xe8] sm:$0x7]   ;;  %292 = vst [vmem:[%s521_s1 + $0x6] ss:$8 sm:$0x7] %v153_v33  }
  0x24   :  { %v145_v35 = vld [vmem:[#allocation0 + $0xd0] sm:$0x7]   ;;  %291 = vst [vmem:[%s521_s1 + $0x5] ss:$8 sm:$0x7] %v149_v34  }
  0x25   :  { %v141_v36 = vld [vmem:[#allocation0 + $0x58] sm:$0x7]   ;;  %290 = vst [vmem:[%s521_s1 + $0x4] ss:$8 sm:$0x7] %v145_v35  }
  0x26   :  { %v137_v38 = vld [vmem:[#allocation0] sm:$0x7]   ;;  %289 = vst [vmem:[%s521_s1 + $0x3] ss:$8 sm:$0x7] %v141_v36  }
  0x27   :  { %v133_v40 = vld [vmem:[#allocation0 + $0xd8] sm:$0x7]   ;;  %288 = vst [vmem:[%s521_s1 + $0x2] ss:$8 sm:$0x7] %v137_v38  }
  0x28   :  { %v130_v41 = vld [vmem:[#allocation0 + $0x60] sm:$0x7]   ;;  %287 = vst [vmem:[%s521_s1 + $0x1] ss:$8 sm:$0x7] %v133_v40  }
  0x29   :  { %131 = vst [vmem:[%s521_s1] ss:$8 sm:$0x7] %v130_v41  }
  0x2a   :  { %294 = vst [vmem:[%s521_s1 + $0x18] ss:$8 sm:$0x7] %v161_v37  }
  0x2b   :  { %295 = vst [vmem:[%s521_s1 + $0x19] ss:$8 sm:$0x7] %v165_v39  }
  0x2c   :  { %296 = vst [vmem:[%s521_s1 + $0x1a] ss:$8 sm:$0x7] %v169_v42  }
  0x2d   :  { %297 = vst [vmem:[%s521_s1 + $0x1b] ss:$8 sm:$0x7] %v173_v43  }
  0x2e   :  { %298 = vst [vmem:[%s521_s1 + $0x1c] ss:$8 sm:$0x7] %v177_v44  }
  0x2f   :  { %299 = vst [vmem:[%s521_s1 + $0x1d] ss:$8 sm:$0x7] %v181_v45  }
  0x30   :  { %300 = vst [vmem:[%s521_s1 + $0x1e] ss:$8 sm:$0x7] %v185_v46  }
  0x31   :  { %301 = vst [vmem:[%s521_s1 + $0x1f] ss:$8 sm:$0x7] %v189_v47  }
  0x32   :  { %302 = vst [vmem:[%s521_s1 + $0x30] ss:$8 sm:$0x7] %v193_v48  }
  0x33   :  { %303 = vst [vmem:[%s521_s1 + $0x31] ss:$8 sm:$0x7] %v197_v49  }
  0x34   :  { %304 = vst [vmem:[%s521_s1 + $0x32] ss:$8 sm:$0x7] %v201_v50  }
  0x35   :  { %305 = vst [vmem:[%s521_s1 + $0x33] ss:$8 sm:$0x7] %v205_v51  }
  0x36   :  { %306 = vst [vmem:[%s521_s1 + $0x34] ss:$8 sm:$0x7] %v209_v52  }
  0x37   :  { %307 = vst [vmem:[%s521_s1 + $0x35] ss:$8 sm:$0x7] %v213_v53  }
  0x38   :  { %308 = vst [vmem:[%s521_s1 + $0x36] ss:$8 sm:$0x7] %v217_v54  }
  0x39   :  { %309 = vst [vmem:[%s521_s1 + $0x37] ss:$8 sm:$0x7] %v221_v55  }
  0x3a   :  { %310 = vst [vmem:[%s521_s1 + $0x48] ss:$8 sm:$0x7] %v225_v56  }
  0x3b   :  { %311 = vst [vmem:[%s521_s1 + $0x49] ss:$8 sm:$0x7] %v229_v57  }
  0x3c   :  { %312 = vst [vmem:[%s521_s1 + $0x4a] ss:$8 sm:$0x7] %v233_v58  }
  0x3d   :  { %313 = vst [vmem:[%s521_s1 + $0x4b] ss:$8 sm:$0x7] %v237_v59  }
  0x3e   :  { %314 = vst [vmem:[%s521_s1 + $0x4c] ss:$8 sm:$0x7] %v241_v60  }
  0x3f   :  { %315 = vst [vmem:[%s521_s1 + $0x4d] ss:$8 sm:$0x7] %v245_v61  }
  0x40   :  { %316 = vst [vmem:[%s521_s1 + $0x4e] ss:$8 sm:$0x7] %v249_v62  }
  0x41   :  { %317 = vst [vmem:[%s521_s1 + $0x4f] ss:$8 sm:$0x7] %v253_v63  }

// kernel: acoustic_generator_forward.56
= control target key start
LH: loop header
LB: loop body
LE: loop exit
PB: predicated region body
PF: predicated region fallthrough
CT: control target
= control target key end

     0   :  { %vm31_vm0 = vcmask 261120   ;;  %s141_s1 = inlined_call_operand.vmem [shape: f32[32,128], index: 1, kind: input, shape index: {}]   ;;  %s142_s0 = inlined_call_operand.vmem [shape: f32[32,32], index: 0, kind: input, shape index: {}]   ;;  %s143_s2 = inlined_call_operand.vmem [shape: f32[1,128], index: 2, kind: input, shape index: {}]   ;;  %s144_s3 = inlined_call_operand.vmem [shape: f32[32,128], index: 3, kind: output, shape index: {}]  }
   0x1   :  { %v23_v0 = vld [vmem:[%s141_s1 + $0x10] sm:$0xff]  ;;  %v24_v1 = vld [vmem:[%s141_s1 + $0x18] sm:$0xff]  ;;  %v21_v2 = vld [vmem:[%s141_s1] sm:$0xff] }
   0x2   :  { %v26_v3 = vpack.c.bf16 %v24_v1, %v23_v0  ;;  %v22_v4 = vld [vmem:[%s141_s1 + $0x8] sm:$0xff]  ;;  %v15_v5 = vld [vmem:[%s142_s0] sm:$0xff]  ;;  %v17_v8 = vld [vmem:[%s142_s0 + $0x10] sm:$0xff] }
   0x3   :  { %v25_v6 = vpack.c.bf16 %v22_v4, %v21_v2  ;;  %v16_v7 = vld [vmem:[%s142_s0 + $0x8] sm:$0xff]  ;;  %v18_v9 = vld [vmem:[%s142_s0 + $0x18] sm:$0xff]  ;;  %v81_v12 = vld [vmem:[%s143_s2] ss:$0 sm:$0xff] }
   0x4   :  { %44 = vmatpush.bf16.msra.mxu0 %v26_v3  ;;  %79 = vmatpush.bf16.msra.mxu1 %v26_v3  ;;  %v19_v10 = vpack.c.bf16 %v16_v7, %v15_v5  ;;  %v20_v11 = vpack.c.bf16 %v18_v9, %v17_v8 }
   0x8   :  { %45 = vmatpush.bf16.msra.mxu0 %v25_v6  ;;  %80 = vmatpush.bf16.msra.mxu1 %v25_v6 }
   0xb   :  { %77 = vmatmul.msk.bf16.vlgmr.msra.gmra.mxu0 %vm31_vm0, %v19_v10  ;;  %78 = vmatmul.msk.bf16.vlgmr.msra.gmra.mxu1 %vm31_vm0, %v20_v11 }
  0x88   :  { %v47_v13 = vpop.f32.mrf.mxu0  ;;  %v52_v14 = vpop.f32.mrf.mxu1 }
  0x89   :  { %v48_v15 = vadd.f32 %v81_v12, %v47_v13  ;;  %v53_v16 = vadd.f32 %v81_v12, %v52_v14 }
  0x8b   :  { %vm57_vm1 = vcmp.ge.f32.partialorder %v48_v15, 0.0  ;;  %v61_v17 = vmul.f32 0.1, %v48_v15  ;;  %vm59_vm2 = vcmp.ge.f32.partialorder %v53_v16, 0.0  ;;  %v63_v18 = vmul.f32 0.1, %v53_v16 }
  0x8d   :  { %v65_v19 = vsel %vm57_vm1, %v48_v15, %v61_v17  ;;  %v67_v20 = vsel %vm59_vm2, %v53_v16, %v63_v18 }
  0x8e   :  { %69 = vst [vmem:[%s144_s3] sm:$0xff] %v65_v19 }
  0x8f   :  { %71 = vst [vmem:[%s144_s3 + $0x10] sm:$0xff] %v67_v20 }
  0x90   :  { %v49_v21 = vpop.f32.mrf.mxu0  ;;  %v54_v22 = vpop.f32.mrf.mxu1 }
  0x91   :  { %v50_v23 = vadd.f32 %v81_v12, %v49_v21  ;;  %v55_v24 = vadd.f32 %v81_v12, %v54_v22 }
  0x93   :  { %vm58_vm3 = vcmp.ge.f32.partialorder %v50_v23, 0.0  ;;  %v62_v25 = vmul.f32 0.1, %v50_v23  ;;  %vm60_vm4 = vcmp.ge.f32.partialorder %v55_v24, 0.0  ;;  %v64_v26 = vmul.f32 0.1, %v55_v24 }
  0x95   :  { %v66_v27 = vsel %vm58_vm3, %v50_v23, %v62_v25  ;;  %v68_v28 = vsel %vm60_vm4, %v55_v24, %v64_v26 }
  0x96   :  { %70 = vst [vmem:[%s144_s3 + $0x8] sm:$0xff] %v66_v27 }
  0x97   :  { %72 = vst [vmem:[%s144_s3 + $0x18] sm:$0xff] %v68_v28 }

// kernel: acoustic_generator_forward.57
= control target key start
LH: loop header
LB: loop body
LE: loop exit
PB: predicated region body
PF: predicated region fallthrough
CT: control target
= control target key end

     0   :  { %vm39_vm0 = vcmask 261120   ;;  %s211_s1 = inlined_call_operand.vmem [shape: f32[32,256], index: 1, kind: input, shape index: {}]   ;;  %s212_s0 = inlined_call_operand.vmem [shape: f32[32,32], index: 0, kind: input, shape index: {}]   ;;  %s213_s2 = inlined_call_operand.vmem [shape: f32[1,256], index: 2, kind: input, shape index: {}]   ;;  %s214_s3 = inlined_call_operand.vmem [shape: f32[32,256], index: 3, kind: output, shape index: {}]  }
   0x1   :  { %v25_v0 = vld [vmem:[%s211_s1 + $0x20] sm:$0xff]  ;;  %v27_v1 = vld [vmem:[%s211_s1 + $0x30] sm:$0xff]  ;;  %v26_v2 = vld [vmem:[%s211_s1 + $0x28] sm:$0xff] }
   0x2   :  { %v31_v3 = vpack.c.bf16 %v27_v1, %v25_v0  ;;  %v28_v4 = vld [vmem:[%s211_s1 + $0x38] sm:$0xff]  ;;  %v21_v5 = vld [vmem:[%s211_s1] sm:$0xff]  ;;  %v23_v6 = vld [vmem:[%s211_s1 + $0x10] sm:$0xff] }
   0x3   :  { %v32_v7 = vpack.c.bf16 %v28_v4, %v26_v2  ;;  %v22_v8 = vld [vmem:[%s211_s1 + $0x8] sm:$0xff]  ;;  %v24_v9 = vld [vmem:[%s211_s1 + $0x18] sm:$0xff]  ;;  %v15_v10 = vld [vmem:[%s212_s0] sm:$0xff]  ;;  %v29_v11 = vpack.c.bf16 %v23_v6, %v21_v5 }
   0x4   :  { %52 = vmatpush.bf16.msra.mxu0 %v31_v3  ;;  %124 = vmatpush.bf16.msra.mxu2 %v31_v3  ;;  %v16_v12 = vld [vmem:[%s212_s0 + $0x8] sm:$0xff]  ;;  %v17_v13 = vld [vmem:[%s212_s0 + $0x10] sm:$0xff]  ;;  %v18_v14 = vld [vmem:[%s212_s0 + $0x18] sm:$0xff]  ;;  %v30_v15 = vpack.c.bf16 %v24_v9, %v22_v8 }
   0x5   :  { %71 = vmatpush.bf16.msra.mxu1 %v32_v7  ;;  %126 = vmatpush.bf16.msra.mxu3 %v32_v7  ;;  %v19_v16 = vpack.c.bf16 %v16_v12, %v15_v10  ;;  %v20_v17 = vpack.c.bf16 %v18_v14, %v17_v13  ;;  %v33_v18 = vld [vmem:[%s213_s2] sm:$0x3] }
   0x6   :  { %v35_v19 = vperm.slane %v33_v18, 0  ;;  %v36_v20 = vperm.slane %v33_v18, 1 }
   0x8   :  { %53 = vmatpush.bf16.msra.mxu0 %v29_v11  ;;  %125 = vmatpush.bf16.msra.mxu2 %v29_v11 }
   0x9   :  { %72 = vmatpush.bf16.msra.mxu1 %v30_v15  ;;  %127 = vmatpush.bf16.msra.mxu3 %v30_v15 }
   0xb   :  { %120 = vmatmul.msk.bf16.vlgmr.msra.gmra.mxu0 %vm39_vm0, %v19_v16  ;;  %121 = vmatmul.msk.bf16.vlgmr.msra.gmra.mxu2 %vm39_vm0, %v20_v17 }
   0xc   :  { %122 = vmatmul.msk.bf16.vlgmr.msra.gmra.mxu1 %vm39_vm0, %v19_v16  ;;  %123 = vmatmul.msk.bf16.vlgmr.msra.gmra.mxu3 %vm39_vm0, %v20_v17 }
  0x88   :  { %v55_v21 = vpop.f32.mrf.mxu0 }
  0x89   :  { %v56_v22 = vadd.f32 %v55_v21, %v35_v19  ;;  %v74_v23 = vpop.f32.mrf.mxu1 }
  0x8a   :  { %v75_v24 = vadd.f32 %v74_v23, %v36_v20 }
  0x8b   :  { %vm84_vm1 = vcmp.ge.f32.partialorder %v56_v22, 0.0  ;;  %v92_v25 = vmul.f32 0.1, %v56_v22 }
  0x8c   :  { %vm85_vm2 = vcmp.ge.f32.partialorder %v75_v24, 0.0  ;;  %v93_v26 = vmul.f32 0.1, %v75_v24 }
  0x8d   :  { %v100_v27 = vsel %vm84_vm1, %v56_v22, %v92_v25 }
  0x8e   :  { %108 = vst [vmem:[%s214_s3] sm:$0xff] %v100_v27  ;;  %v101_v28 = vsel %vm85_vm2, %v75_v24, %v93_v26  ;;  %v60_v29 = vpop.f32.mrf.mxu2 }
  0x8f   :  { %109 = vst [vmem:[%s214_s3 + $0x8] sm:$0xff] %v101_v28  ;;  %v61_v30 = vadd.f32 %v60_v29, %v35_v19  ;;  %v79_v31 = vpop.f32.mrf.mxu3 }
  0x90   :  { %v80_v32 = vadd.f32 %v79_v31, %v36_v20  ;;  %v57_v33 = vpop.f32.mrf.mxu0 }
  0x91   :  { %vm88_vm3 = vcmp.ge.f32.partialorder %v61_v30, 0.0  ;;  %v96_v34 = vmul.f32 0.1, %v61_v30  ;;  %v58_v35 = vadd.f32 %v57_v33, %v35_v19  ;;  %v76_v36 = vpop.f32.mrf.mxu1 }
  0x92   :  { %vm89_vm4 = vcmp.ge.f32.partialorder %v80_v32, 0.0  ;;  %v97_v37 = vmul.f32 0.1, %v80_v32  ;;  %v77_v38 = vadd.f32 %v76_v36, %v36_v20 }
  0x93   :  { %v104_v39 = vsel %vm88_vm3, %v61_v30, %v96_v34  ;;  %vm86_vm5 = vcmp.ge.f32.partialorder %v58_v35, 0.0  ;;  %v94_v40 = vmul.f32 0.1, %v58_v35 }
  0x94   :  { %112 = vst [vmem:[%s214_s3 + $0x20] sm:$0xff] %v104_v39  ;;  %v105_v41 = vsel %vm89_vm4, %v80_v32, %v97_v37  ;;  %vm87_vm6 = vcmp.ge.f32.partialorder %v77_v38, 0.0  ;;  %v95_v42 = vmul.f32 0.1, %v77_v38 }
  0x95   :  { %113 = vst [vmem:[%s214_s3 + $0x28] sm:$0xff] %v105_v41  ;;  %v102_v43 = vsel %vm86_vm5, %v58_v35, %v94_v40 }
  0x96   :  { %110 = vst [vmem:[%s214_s3 + $0x10] sm:$0xff] %v102_v43  ;;  %v103_v44 = vsel %vm87_vm6, %v77_v38, %v95_v42  ;;  %v62_v45 = vpop.f32.mrf.mxu2 }
  0x97   :  { %111 = vst [vmem:[%s214_s3 + $0x18] sm:$0xff] %v103_v44  ;;  %v63_v46 = vadd.f32 %v62_v45, %v35_v19  ;;  %v81_v47 = vpop.f32.mrf.mxu3 }
  0x98   :  { %v82_v48 = vadd.f32 %v81_v47, %v36_v20 }
  0x99   :  { %vm90_vm7 = vcmp.ge.f32.partialorder %v63_v46, 0.0  ;;  %v98_v49 = vmul.f32 0.1, %v63_v46 }
  0x9a   :  { %vm91_vm8 = vcmp.ge.f32.partialorder %v82_v48, 0.0  ;;  %v99_v50 = vmul.f32 0.1, %v82_v48 }
  0x9b   :  { %v106_v51 = vsel %vm90_vm7, %v63_v46, %v98_v49 }
  0x9c   :  { %114 = vst [vmem:[%s214_s3 + $0x30] sm:$0xff] %v106_v51  ;;  %v107_v52 = vsel %vm91_vm8, %v82_v48, %v99_v50 }
  0x9d   :  { %115 = vst [vmem:[%s214_s3 + $0x38] sm:$0xff] %v107_v52 }

// kernel: acoustic_generator_forward.58
= control target key start
LH: loop header
LB: loop body
LE: loop exit
PB: predicated region body
PF: predicated region fallthrough
CT: control target
= control target key end

     0   :  { %s296_s1 = inlined_call_operand.vmem [shape: f32[256,128], index: 1, kind: input, shape index: {}]   ;;  %s297_s2 = inlined_call_operand.vmem [shape: f32[1,128], index: 2, kind: input, shape index: {}]   ;;  %s298_s0 = inlined_call_operand.vmem [shape: f32[32,256], index: 0, kind: input, shape index: {}]   ;;  %s299_s3 = inlined_call_operand.vmem [shape: f32[32,128], index: 3, kind: output, shape index: {}]  }
   0x1   :  { %v40_v0 = vld [vmem:[%s296_s1 + $0x70] sm:$0xff]  ;;  %v41_v1 = vld [vmem:[%s296_s1 + $0x78] sm:$0xff]  ;;  %v38_v5 = vld [vmem:[%s296_s1 + $0x60] sm:$0xff] }
   0x2   :  { %v56_v2 = vld [vmem:[%s296_s1 + $0xf0] sm:$0xff]  ;;  %v65_v3 = vpack.c.bf16 %v41_v1, %v40_v0  ;;  %v57_v4 = vld [vmem:[%s296_s1 + $0xf8] sm:$0xff]  ;;  %v39_v6 = vld [vmem:[%s296_s1 + $0x68] sm:$0xff] }
   0x3   :  { %v73_v7 = vpack.c.bf16 %v57_v4, %v56_v2  ;;  %v54_v8 = vld [vmem:[%s296_s1 + $0xe0] sm:$0xff]  ;;  %v55_v9 = vld [vmem:[%s296_s1 + $0xe8] sm:$0xff]  ;;  %v64_v10 = vpack.c.bf16 %v39_v6, %v38_v5  ;;  %v36_v12 = vld [vmem:[%s296_s1 + $0x50] sm:$0xff] }
   0x4   :  { %78 = vmatpush.bf16.msra.mxu0 %v65_v3  ;;  %124 = vmatpush.bf16.msra.mxu2 %v65_v3  ;;  %v72_v11 = vpack.c.bf16 %v55_v9, %v54_v8  ;;  %v37_v13 = vld [vmem:[%s296_s1 + $0x58] sm:$0xff]  ;;  %v52_v14 = vld [vmem:[%s296_s1 + $0xd0] sm:$0xff]  ;;  %v34_v18 = vld [vmem:[%s296_s1 + $0x40] sm:$0xff] }
   0x5   :  { %97 = vmatpush.bf16.msra.mxu1 %v73_v7  ;;  %132 = vmatpush.bf16.msra.mxu3 %v73_v7  ;;  %v53_v15 = vld [vmem:[%s296_s1 + $0xd8] sm:$0xff]  ;;  %v63_v16 = vpack.c.bf16 %v37_v13, %v36_v12  ;;  %v35_v19 = vld [vmem:[%s296_s1 + $0x48] sm:$0xff]  ;;  %v50_v20 = vld [vmem:[%s296_s1 + $0xc0] sm:$0xff] }
   0x6   :  { %v71_v17 = vpack.c.bf16 %v53_v15, %v52_v14  ;;  %v51_v21 = vld [vmem:[%s296_s1 + $0xc8] sm:$0xff]  ;;  %v62_v22 = vpack.c.bf16 %v35_v19, %v34_v18  ;;  %v32_v24 = vld [vmem:[%s296_s1 + $0x30] sm:$0xff]  ;;  %v33_v25 = vld [vmem:[%s296_s1 + $0x38] sm:$0xff] }
   0x7   :  { %v70_v23 = vpack.c.bf16 %v51_v21, %v50_v20  ;;  %v48_v26 = vld [vmem:[%s296_s1 + $0xb0] sm:$0xff]  ;;  %v49_v27 = vld [vmem:[%s296_s1 + $0xb8] sm:$0xff]  ;;  %v61_v28 = vpack.c.bf16 %v33_v25, %v32_v24  ;;  %v30_v30 = vld [vmem:[%s296_s1 + $0x20] sm:$0xff] }
   0x8   :  { %79 = vmatpush.bf16.msra.mxu0 %v64_v10  ;;  %125 = vmatpush.bf16.msra.mxu2 %v64_v10  ;;  %v69_v29 = vpack.c.bf16 %v49_v27, %v48_v26  ;;  %v31_v31 = vld [vmem:[%s296_s1 + $0x28] sm:$0xff]  ;;  %v46_v32 = vld [vmem:[%s296_s1 + $0xa0] sm:$0xff]  ;;  %v28_v36 = vld [vmem:[%s296_s1 + $0x10] sm:$0xff] }
   0x9   :  { %98 = vmatpush.bf16.msra.mxu1 %v72_v11  ;;  %133 = vmatpush.bf16.msra.mxu3 %v72_v11  ;;  %v47_v33 = vld [vmem:[%s296_s1 + $0xa8] sm:$0xff]  ;;  %v60_v34 = vpack.c.bf16 %v31_v31, %v30_v30  ;;  %v29_v37 = vld [vmem:[%s296_s1 + $0x18] sm:$0xff]  ;;  %v44_v38 = vld [vmem:[%s296_s1 + $0x90] sm:$0xff] }
   0xa   :  { %v68_v35 = vpack.c.bf16 %v47_v33, %v46_v32  ;;  %v45_v39 = vld [vmem:[%s296_s1 + $0x98] sm:$0xff]  ;;  %v59_v40 = vpack.c.bf16 %v29_v37, %v28_v36  ;;  %v26_v42 = vld [vmem:[%s296_s1] sm:$0xff]  ;;  %v27_v43 = vld [vmem:[%s296_s1 + $0x8] sm:$0xff] }
   0xb   :  { %v67_v41 = vpack.c.bf16 %v45_v39, %v44_v38  ;;  %v42_v44 = vld [vmem:[%s296_s1 + $0x80] sm:$0xff]  ;;  %v43_v45 = vld [vmem:[%s296_s1 + $0x88] sm:$0xff]  ;;  %v16_v47 = vld [vmem:[%s298_s0 + $0x10] sm:$0xff]  ;;  %v58_v48 = vpack.c.bf16 %v27_v43, %v26_v42 }
   0xc   :  { %80 = vmatpush.bf16.msra.mxu0 %v63_v16  ;;  %126 = vmatpush.bf16.msra.mxu2 %v63_v16  ;;  %v14_v46 = vld [vmem:[%s298_s0] sm:$0xff]  ;;  %v20_v50 = vld [vmem:[%s298_s0 + $0x30] sm:$0xff]  ;;  %v15_v51 = vld [vmem:[%s298_s0 + $0x8] sm:$0xff]  ;;  %v66_v52 = vpack.c.bf16 %v43_v45, %v42_v44 }
   0xd   :  { %99 = vmatpush.bf16.msra.mxu1 %v71_v17  ;;  %134 = vmatpush.bf16.msra.mxu3 %v71_v17  ;;  %v18_v49 = vld [vmem:[%s298_s0 + $0x20] sm:$0xff]  ;;  %v17_v53 = vld [vmem:[%s298_s0 + $0x18] sm:$0xff]  ;;  %v19_v54 = vld [vmem:[%s298_s0 + $0x28] sm:$0xff]  ;;  %v22_v56 = vpack.c.bf16 %v16_v47, %v14_v46 }
   0xe   :  { %v21_v55 = vld [vmem:[%s298_s0 + $0x38] sm:$0xff]  ;;  %v24_v57 = vpack.c.bf16 %v20_v50, %v18_v49  ;;  %v23_v58 = vpack.c.bf16 %v17_v53, %v15_v51  ;;  %v140_v60 = vld [vmem:[%s297_s2] ss:$0 sm:$0xff] }
   0xf   :  { %v25_v59 = vpack.c.bf16 %v21_v55, %v19_v54 }
  0x10   :  { %81 = vmatpush.bf16.msra.mxu0 %v62_v22  ;;  %127 = vmatpush.bf16.msra.mxu2 %v62_v22 }
  0x11   :  { %100 = vmatpush.bf16.msra.mxu1 %v70_v23  ;;  %135 = vmatpush.bf16.msra.mxu3 %v70_v23 }
  0x14   :  { %82 = vmatpush.bf16.msra.mxu0 %v61_v28  ;;  %128 = vmatpush.bf16.msra.mxu2 %v61_v28 }
  0x15   :  { %101 = vmatpush.bf16.msra.mxu1 %v69_v29  ;;  %136 = vmatpush.bf16.msra.mxu3 %v69_v29 }
  0x18   :  { %83 = vmatpush.bf16.msra.mxu0 %v60_v34  ;;  %129 = vmatpush.bf16.msra.mxu2 %v60_v34 }
  0x19   :  { %102 = vmatpush.bf16.msra.mxu1 %v68_v35  ;;  %137 = vmatpush.bf16.msra.mxu3 %v68_v35 }
  0x1c   :  { %84 = vmatpush.bf16.msra.mxu0 %v59_v40  ;;  %130 = vmatpush.bf16.msra.mxu2 %v59_v40 }
  0x1d   :  { %103 = vmatpush.bf16.msra.mxu1 %v67_v41  ;;  %138 = vmatpush.bf16.msra.mxu3 %v67_v41 }
  0x20   :  { %85 = vmatpush.bf16.msra.mxu0 %v58_v48  ;;  %131 = vmatpush.bf16.msra.mxu2 %v58_v48 }
  0x21   :  { %104 = vmatpush.bf16.msra.mxu1 %v66_v52  ;;  %139 = vmatpush.bf16.msra.mxu3 %v66_v52 }
  0x23   :  { %86 = vmatmul.bf16.vlgmr.msra.gmra.mxu0 %v22_v56  ;;  %91 = vmatmul.bf16.vlgmr.msra.gmra.mxu2 %v24_v57 }
  0x24   :  { %105 = vmatmul.bf16.vlgmr.msra.gmra.mxu1 %v23_v58  ;;  %110 = vmatmul.bf16.vlgmr.msra.gmra.mxu3 %v25_v59 }
  0xa0   :  { %v87_v61 = vpop.f32.mrf.mxu0 }
  0xa1   :  { %v88_v62 = vadd.f32 %v140_v60, %v87_v61  ;;  %v106_v63 = vpop.f32.mrf.mxu1 }
  0xa3   :  { %v107_v0 = vadd.f32 %v106_v63, %v88_v62 }
  0xa5   :  { %116 = vst [vmem:[%s299_s3] sm:$0xff] %v107_v0 }
  0xa6   :  { %v92_v1 = vpop.f32.mrf.mxu2 }
  0xa7   :  { %v93_v2 = vadd.f32 %v140_v60, %v92_v1  ;;  %v111_v3 = vpop.f32.mrf.mxu3 }
  0xa8   :  { %v89_v4 = vpop.f32.mrf.mxu0 }
  0xa9   :  { %v112_v5 = vadd.f32 %v111_v3, %v93_v2  ;;  %v90_v6 = vadd.f32 %v140_v60, %v89_v4  ;;  %v108_v7 = vpop.f32.mrf.mxu1 }
  0xab   :  { %118 = vst [vmem:[%s299_s3 + $0x10] sm:$0xff] %v112_v5  ;;  %v109_v8 = vadd.f32 %v108_v7, %v90_v6 }
  0xad   :  { %117 = vst [vmem:[%s299_s3 + $0x8] sm:$0xff] %v109_v8 }
  0xae   :  { %v94_v9 = vpop.f32.mrf.mxu2 }
  0xaf   :  { %v95_v10 = vadd.f32 %v140_v60, %v94_v9  ;;  %v113_v11 = vpop.f32.mrf.mxu3 }
  0xb1   :  { %v114_v12 = vadd.f32 %v113_v11, %v95_v10 }
  0xb3   :  { %119 = vst [vmem:[%s299_s3 + $0x18] sm:$0xff] %v114_v12 }

// kernel: acoustic_generator_forward.59
= control target key start
LH: loop header
LB: loop body
LE: loop exit
PB: predicated region body
PF: predicated region fallthrough
CT: control target
= control target key end

     0   :  { %s167_s0 = inlined_call_operand.vmem [shape: f32[32,32], index: 0, kind: input, shape index: {}]   ;;  %s168_s1 = inlined_call_operand.vmem [shape: f32[32,128], index: 1, kind: input, shape index: {}]   ;;  %s169_s2 = inlined_call_operand.vmem [shape: f32[1,128], index: 2, kind: input, shape index: {}]   ;;  %s170_s3 = inlined_call_operand.hbm [shape: f32[32,128], index: 3, kind: output, shape index: {}]  }
   0x1   :  { %v24_v0 = vld [vmem:[%s168_s1 + $0x10] sm:$0xff]  ;;  %v25_v1 = vld [vmem:[%s168_s1 + $0x18] sm:$0xff]  ;;  %v22_v2 = vld [vmem:[%s168_s1] sm:$0xff] }
   0x2   :  { %v27_v3 = vpack.c.bf16 %v25_v1, %v24_v0  ;;  %v23_v4 = vld [vmem:[%s168_s1 + $0x8] sm:$0xff]  ;;  %v16_v5 = vld [vmem:[%s167_s0] sm:$0xff]  ;;  %v18_v8 = vld [vmem:[%s167_s0 + $0x10] sm:$0xff] }
   0x3   :  { %v17_v6 = vld [vmem:[%s167_s0 + $0x8] sm:$0xff]  ;;  %v26_v7 = vpack.c.bf16 %v23_v4, %v22_v2  ;;  %v19_v9 = vld [vmem:[%s167_s0 + $0x18] sm:$0xff] }
   0x4   :  { %45 = vmatpush.bf16.msra.mxu0 %v27_v3  ;;  %82 = vmatpush.bf16.msra.mxu1 %v27_v3 }
   0x5   :  { %8 = vsyncpa [#allocation3], 0  ;;  %v20_v10 = vpack.c.bf16 %v17_v6, %v16_v5  ;;  %v21_v11 = vpack.c.bf16 %v19_v9, %v18_v8  ;;  %vm32_vm0 = vcmask 261120   ;;  %v87_v12 = vld [vmem:[%s169_s2] ss:$0 sm:$0xff]  ;;  %s114_s29 = smov [#allocation2]  }
   0x6   :  { %s66_s0 = sshll.u32 %s114_s29, 4  ;;  %s68_s5 = sshll.u32 %s170_s3, 4  ;;  %s67_s0 = int_to_ptr.vmem [resolvable:$true] %s66_s0  ;;  %s69_s5 = int_to_ptr.hbm [resolvable:$true] %s68_s5 }
   0x7   :  { %s115_s2 = smov 128   ;;  %s116_s6 = smov 8  }
   0x8   :  { %46 = vmatpush.bf16.msra.mxu0 %v26_v7  ;;  %83 = vmatpush.bf16.msra.mxu1 %v26_v7 }
   0xb   :  { %80 = vmatmul.msk.bf16.vlgmr.msra.gmra.mxu0 %vm32_vm0, %v20_v10  ;;  %81 = vmatmul.msk.bf16.vlgmr.msra.gmra.mxu1 %vm32_vm0, %v21_v11 }
  0x88   :  { %v48_v13 = vpop.f32.mrf.mxu0  ;;  %v53_v14 = vpop.f32.mrf.mxu1 }
  0x89   :  { %v49_v15 = vadd.f32 %v87_v12, %v48_v13  ;;  %v54_v16 = vadd.f32 %v87_v12, %v53_v14 }
  0x8b   :  { %58 = vst [vmem:[#allocation2] sm:$0xff] %v49_v15 }
  0x8c   :  { %60 = vst [vmem:[#allocation2 + $0x10] sm:$0xff] %v54_v16 }
  0x90   :  { %v50_v17 = vpop.f32.mrf.mxu0  ;;  %v55_v18 = vpop.f32.mrf.mxu1 }
  0x91   :  { %v51_v19 = vadd.f32 %v87_v12, %v50_v17  ;;  %v56_v20 = vadd.f32 %v87_v12, %v55_v18 }
  0x93   :  { %59 = vst [vmem:[#allocation2 + $0x8] sm:$0xff] %v51_v19 }
  0x94   :  { %61 = vst [vmem:[#allocation2 + $0x18] sm:$0xff] %v56_v20 }
  0x95   :  { %74 = dma.vmem_to_hbm [thread:$0]  %s67_s0, 512, %s69_s5, [#allocation3], %s115_s2, %s115_s2, %s116_s6  }
  0x96   :  { %112 = dma.done.wait [#allocation3], 512  }
  0x97   :  { %113 = vsyncadd [#allocation3], 4294966784 }
  0x98   :  { %79 = vsyncpa [#allocation3], 1 }

</bundles_post_ra>
